<compile_context>
chip_gen: v7x
topology: tpu7x:2x2x1
jax: 0.10.0
libtpu: 0.0.40
codegen_flags: <defaults>
</compile_context>

<pallas_src>
import functools

import jax
import jax.numpy as jnp
from jax.experimental import pallas as pl
from jax.experimental.pallas import tpu as pltpu


def _round_up(x, m):
    return (x + m - 1) // m * m


def _vq_kernel(*refs, seq_len, k_chunk, mm_dtype, separate_mm, exact,
               needs_mask):
    if separate_mm:
        x_ref, e_ref, e_mm_ref, esq_ref, q_ref, stats_ref = refs
    else:
        x_ref, e_ref, esq_ref, q_ref, stats_ref = refs
        e_mm_ref = e_ref

    d, tile_t = x_ref.shape[1], x_ref.shape[2]
    k_pad = e_ref.shape[0]
    stats_w = stats_ref.shape[-1]
    prec = jax.lax.Precision.HIGHEST if exact else jax.lax.Precision.DEFAULT

    xb = x_ref[0]                               # (D, TILE_T), time on lanes
    xb_f32 = xb.astype(jnp.float32)
    x_mm = xb.astype(mm_dtype)

    chunk_starts = list(range(0, k_pad, k_chunk))

    # ---- Pass 1: chunked running argmin over codes -------------------------
    # dis[k, t] = 0.5*||e_k||^2 - e_k . x_t  (same argmin as ||x_t - e_k||^2)
    dmin = jnp.full((1, tile_t), jnp.inf, dtype=jnp.float32)
    idx = jnp.zeros((1, tile_t), jnp.int32)
    for s in chunk_starts:
        kc = min(k_chunk, k_pad - s)
        dots = jax.lax.dot_general(
            e_mm_ref[s:s + kc, :], x_mm, (((1,), (0,)), ((), ())),
            preferred_element_type=jnp.float32, precision=prec)  # (kc, TILE_T)
        dis = esq_ref[s:s + kc, :] - dots
        kf = jax.lax.broadcasted_iota(jnp.int32, (kc, tile_t), 0) + s
        dmin_c = jnp.min(dis, axis=0, keepdims=True)             # (1, TILE_T)
        cand = jnp.where(dis <= dmin_c, kf, jnp.int32(k_pad))
        idx_c = jnp.min(cand, axis=0, keepdims=True)             # first min
        idx = jnp.where(dmin_c < dmin, idx_c, idx)               # keep earlier
        dmin = jnp.minimum(dmin_c, dmin)

    if needs_mask:
        # Columns beyond the true sequence length: mark invalid so they never
        # match any code (zero onehot -> zero quant / counts / SSE).
        lane = jax.lax.broadcasted_iota(jnp.int32, (1, tile_t), 1)
        valid = (lane + pl.program_id(1) * tile_t) < seq_len
        idx = jnp.where(valid, idx, jnp.int32(-1))

    # ---- Pass 2: quantized slab + lane-dense per-code counts ---------------
    ones_row = jnp.ones((1, tile_t), jnp.float32)
    acc = jnp.zeros((d, tile_t), jnp.float32)
    cnt_rows = []
    for s in chunk_starts:
        kc = min(k_chunk, k_pad - s)
        kf = jax.lax.broadcasted_iota(jnp.int32, (kc, tile_t), 0) + s
        onehot = (kf == idx).astype(jnp.float32)                 # (kc, TILE_T)
        # counts[k] = sum_t onehot[k, t] -> lane-dense (1, kc) on the MXU.
        cnt_rows.append(jax.lax.dot_general(
            ones_row, onehot, (((1,), (1,)), ((), ())),
            preferred_element_type=jnp.float32))
        if exact:
            e_q, oh_q = e_ref[s:s + kc, :], onehot
        else:
            e_q, oh_q = e_mm_ref[s:s + kc, :], onehot.astype(mm_dtype)
        # quant slab directly in (D, TILE_T): e_chunk^T @ onehot_chunk.
        acc = acc + jax.lax.dot_general(
            e_q, oh_q, (((0,), (0,)), ((), ())),
            preferred_element_type=jnp.float32, precision=prec)

    q_ref[0] = acc.astype(q_ref.dtype)

    # Per-tile partial SSE (padded rows/columns contribute exactly zero).
    diff = acc - xb_f32
    sse = jnp.sum(jnp.sum(diff * diff, axis=1, keepdims=True),
                  axis=0, keepdims=True)                          # (1, 1)

    cnt_row = cnt_rows[0] if len(cnt_rows) == 1 else jnp.concatenate(
        cnt_rows, axis=1)                                         # (1, K_pad)
    parts = [cnt_row, sse]
    pad_w = stats_w - k_pad - 1
    if pad_w:
        parts.append(jnp.zeros((1, pad_w), jnp.float32))
    stats_ref[0, 0] = jnp.concatenate(parts, axis=1)              # (1, stats_w)


def _vmem_limit_bytes():
    """Generation-aware scoped-VMEM request."""
    try:
        cap = int(pltpu.get_tpu_info().vmem_capacity_bytes)
    except Exception:
        return 48 * 1024 * 1024                    # unknown: known-safe value
    if cap >= 128 * 1024 * 1024:                   # v5e / v6e (128 MiB)
        return 100 * 1024 * 1024
    # v7x-class (64 MiB physical): leave room for slabs + compiler scratch.
    return max(min(40 * 1024 * 1024, cap - 24 * 1024 * 1024), 16 * 1024 * 1024)


def _choose_tile_t(t_pad, d, k_pad, k_chunk, x_itemsize, mm_itemsize,
                   out_itemsize, vmem_limit, single_buffer):
    """Largest lane-dense TILE_T dividing t_pad that fits the VMEM budget."""
    cb_bufs = 1 if single_buffer else 2
    resident = cb_bufs * k_pad * (d * (4 + mm_itemsize) + 4)  # e (+e_mm) + esq
    budget = int(vmem_limit * 0.85) - resident
    for cand in (1024, 512, 256, 128):
        if t_pad % cand:
            continue
        per_tile = (2 * d * cand * x_itemsize        # x slab (double-buffered)
                    + 2 * d * cand * out_itemsize    # quant slab
                    + 5 * k_chunk * cand * 4         # chunk-local temporaries
                    + 2 * d * cand * 4)              # f32 accumulator + slack
        if per_tile <= budget:
            return cand
    return 128


def vector_quantize(x, embedding, beta=0.25, *, matmul_dtype=jnp.bfloat16,
                    k_chunk=1024):
    """VQ-VAE forward.  x: (B, D, T), embedding: (K, D).

    Returns (quant (B, D, T), vq_loss scalar, perplexity scalar) — the forward
    values of the PyTorch module (straight-through output == quant).
    matmul_dtype=jnp.float32 gives an exact (HIGHEST-precision) argmin;
    bf16 (default) runs the distance/quant matmuls on the MXU in bf16 and may
    flip near-tie code assignments.
    """
    B, D, T = x.shape
    K = embedding.shape[0]
    if not jnp.issubdtype(x.dtype, jnp.floating):
        x = x.astype(jnp.float32)
    out_dtype = x.dtype

    exact = jnp.dtype(matmul_dtype) == jnp.dtype(jnp.float32)
    separate_mm = not exact

    # Codebook padded to a multiple of 16 rows (f32/bf16 sublane tiling); the
    # padded rows get a huge distance bias so they can never win the argmin.
    e = embedding.astype(jnp.float32)
    K_pad = _round_up(K, 16)
    if K_pad != K:
        e = jnp.concatenate([e, jnp.zeros((K_pad - K, D), jnp.float32)], axis=0)
    esq = 0.5 * jnp.sum(e * e, axis=1, keepdims=True)            # (K_pad, 1)
    if K_pad != K:
        row = jnp.arange(K_pad)[:, None]
        esq = jnp.where(row < K, esq, jnp.float32(1e30))
    e_mm = None if exact else e.astype(matmul_dtype)             # resident copy

    # Lane-dense time axis: pad T up to a multiple of 128, mask the tail.
    T_pad = _round_up(T, 128)
    needs_mask = T_pad != T
    x_p = x if not needs_mask else jnp.pad(x, ((0, 0), (0, 0), (0, T_pad - T)))

    k_chunk = min(_round_up(k_chunk, 16), K_pad)
    vmem_limit = _vmem_limit_bytes()
    mm_itemsize = 0 if exact else jnp.dtype(matmul_dtype).itemsize
    single_buffer = hasattr(pl, "Buffered")
    TILE_T = _choose_tile_t(T_pad, D, K_pad, k_chunk, x_p.dtype.itemsize,
                            mm_itemsize, jnp.dtype(out_dtype).itemsize,
                            vmem_limit, single_buffer)
    num_t = T_pad // TILE_T
    stats_w = _round_up(K_pad + 1, 128)

    kernel = functools.partial(
        _vq_kernel, seq_len=T, k_chunk=k_chunk, mm_dtype=matmul_dtype,
        separate_mm=separate_mm, exact=exact, needs_mask=needs_mask)

    flops = int(B * T_pad * K_pad * (4 * D + 2))
    bytes_accessed = int(
        x_p.dtype.itemsize * B * D * T_pad
        + jnp.dtype(out_dtype).itemsize * B * D * T_pad
        + 4 * K_pad * (D + 1) + mm_itemsize * K_pad * D
        + 4 * B * num_t * stats_w)

    def _build(use_single_buffer):
        res_kw = {"pipeline_mode": pl.Buffered(1)} if use_single_buffer else {}
        in_specs = [pl.BlockSpec((1, D, TILE_T), lambda b, t: (b, 0, t))]
        in_specs.append(pl.BlockSpec((K_pad, D), lambda b, t: (0, 0), **res_kw))
        if separate_mm:
            in_specs.append(
                pl.BlockSpec((K_pad, D), lambda b, t: (0, 0), **res_kw))
        in_specs.append(pl.BlockSpec((K_pad, 1), lambda b, t: (0, 0), **res_kw))
        return pl.pallas_call(
            kernel,
            grid=(B, num_t),
            in_specs=in_specs,
            out_specs=(
                pl.BlockSpec((1, D, TILE_T), lambda b, t: (b, 0, t)),
                pl.BlockSpec((1, 1, 1, stats_w), lambda b, t: (b, t, 0, 0)),
            ),
            out_shape=(
                jax.ShapeDtypeStruct((B, D, T_pad), out_dtype),
                jax.ShapeDtypeStruct((B, num_t, 1, stats_w), jnp.float32),
            ),
            compiler_params=pltpu.CompilerParams(
                dimension_semantics=("parallel", "parallel"),
                vmem_limit_bytes=int(vmem_limit)),
            cost_estimate=pl.CostEstimate(flops=flops, transcendentals=0,
                                          bytes_accessed=bytes_accessed),
        )

    operands = (x_p, e, esq) if exact else (x_p, e, e_mm, esq)
    try:
        quant_p, stats = _build(single_buffer)(*operands)
    except Exception:  # fall back to default double-buffered resident inputs
        quant_p, stats = _build(False)(*operands)

    # Tiny cross-tile reductions finalized in XLA.
    quant = quant_p[:, :, :T]
    n = B * T
    counts = jnp.sum(stats[:, :, 0, :K], axis=(0, 1))            # (K,)
    sse = jnp.sum(stats[:, :, 0, K_pad])
    vq_loss = (1.0 + beta) * sse / (n * D)
    avg = counts / n
    perp = jnp.exp(-jnp.sum(avg * jnp.log(avg + 1e-10)))
    return quant, vq_loss, perp


def _reference(x, embedding, beta=0.25):
    """Pure-JAX f32 reference of the PyTorch forward pass."""
    B, D, T = x.shape
    K = embedding.shape[0]
    inp = jnp.transpose(x, (0, 2, 1)).reshape(-1, D).astype(jnp.float32)
    emb = embedding.astype(jnp.float32)
    dis = (jnp.sum(inp ** 2, axis=1, keepdims=True)
           + jnp.sum(emb ** 2, axis=1)
           - 2.0 * inp @ emb.T)
    ind = jnp.argmin(dis, axis=1)
    enc = jax.nn.one_hot(ind, K, dtype=jnp.float32)
    quant = enc @ emb
    mse = jnp.mean((quant - inp) ** 2)
    loss = (1.0 + beta) * mse
    avg = jnp.mean(enc, axis=0)
    perp = jnp.exp(-jnp.sum(avg * jnp.log(avg + 1e-10)))
    q = jnp.transpose(quant.reshape(B, T, D), (0, 2, 1))
    return q, loss, perp


if __name__ == "__main__":
    beta = 0.25
    key = jax.random.PRNGKey(0)
    kx, ke, kx2, ke2 = jax.random.split(key, 4)

    # --- Test 1: module-sized config, exact (f32, HIGHEST) distance path ----
    K, D, B, T = 64, 32, 2, 8
    x = jax.random.normal(kx, (B, D, T), dtype=jnp.float32)
    # nn.Embedding(K, D) with weight ~ U(-1/K, 1/K), deterministic init
    emb = jax.random.uniform(ke, (K, D), dtype=jnp.float32,
                             minval=-1.0 / K, maxval=1.0 / K)

    quant, vq_loss, perp = vector_quantize(x, emb, beta=beta,
                                           matmul_dtype=jnp.float32)
    jax.block_until_ready((quant, vq_loss, perp))
    q_ref, l_ref, p_ref = _reference(x, emb, beta=beta)
    assert quant.shape == (B, D, T)
    assert jnp.allclose(quant, q_ref, atol=1e-5, rtol=1e-5)
    assert jnp.allclose(vq_loss, l_ref, atol=1e-5, rtol=1e-5)
    assert jnp.allclose(perp, p_ref, atol=1e-4, rtol=1e-4)

    # --- Test 2: bf16 MXU distance path (near-tie flips tolerated) ----------
    quant_bf, loss_bf, perp_bf = vector_quantize(x, emb, beta=beta)
    jax.block_until_ready((quant_bf, loss_bf, perp_bf))
    assert quant_bf.shape == (B, D, T)
    assert bool(jnp.isfinite(loss_bf)) and bool(jnp.isfinite(perp_bf))
    assert jnp.allclose(quant_bf, q_ref, atol=6e-2)

    # --- Test 3: ragged T (pad+mask), non-multiple-of-16 K, K-chunking ------
    K2, D2, B2, T2 = 100, 32, 2, 300
    x2 = jax.random.normal(kx2, (B2, D2, T2), dtype=jnp.float32)
    emb2 = jax.random.uniform(ke2, (K2, D2), dtype=jnp.float32,
                              minval=-1.0 / K2, maxval=1.0 / K2)
    q3, l3, p3 = vector_quantize(x2, emb2, beta=beta,
                                 matmul_dtype=jnp.float32, k_chunk=64)
    jax.block_until_ready((q3, l3, p3))
    q3_ref, l3_ref, p3_ref = _reference(x2, emb2, beta=beta)
    assert q3.shape == (B2, D2, T2)
    assert jnp.allclose(l3, l3_ref, atol=1e-4, rtol=1e-4)
    assert jnp.allclose(p3, p3_ref, rtol=2e-2, atol=0.0)
    assert jnp.allclose(q3, q3_ref, atol=5e-2)   # loose: near-tie flips allowed

    print("KERNEL_OK")
</pallas_src>

<mosaic_0001>
module attributes {stable_mosaic.version = 11 : i64} {
  func.func @_vq_kernel(%arg0: i32, %arg1: i32, %arg2: memref<1x32x128xf32, #tpu.memory_space<vmem>>, %arg3: memref<64x32xf32, #tpu.memory_space<vmem>>, %arg4: memref<64x1xf32, #tpu.memory_space<vmem>>, %arg5: memref<1x32x128xf32, #tpu.memory_space<vmem>>, %arg6: memref<1x1x1x128xf32, #tpu.memory_space<vmem>>) attributes {dimension_semantics = [#tpu.dimension_semantics<parallel>, #tpu.dimension_semantics<parallel>], iteration_bounds = array<i64: 2, 1>, scalar_prefetch = 0 : i64, scratch_operands = 0 : i64, tpu.core_type = #tpu.core_type<tc>, window_params = [{transform_indices = @transform_0, window_bounds = array<i64: 1, 32, 128>}, {pipeline_mode = #tpu.pipeline_mode<synchronous>, transform_indices = @transform_1, window_bounds = array<i64: 64, 32>}, {pipeline_mode = #tpu.pipeline_mode<synchronous>, transform_indices = @transform_2, window_bounds = array<i64: 64, 1>}, {transform_indices = @transform_3, window_bounds = array<i64: 1, 32, 128>}, {transform_indices = @transform_4, window_bounds = array<i64: 1, 1, 1, 128>}]} {
    %c0 = arith.constant 0 : index
    %c0_0 = arith.constant 0 : index
    %c0_1 = arith.constant 0 : index
    %0 = vector.load %arg2[%c0, %c0_0, %c0_1] : memref<1x32x128xf32, #tpu.memory_space<vmem>>, vector<1x32x128xf32>
    %1 = vector.shape_cast %0 : vector<1x32x128xf32> to vector<32x128xf32>
    %cst = arith.constant 0x7F800000 : f32
    %2 = vector.broadcast %cst : f32 to vector<1x128xf32>
    %c0_i32 = arith.constant 0 : i32
    %3 = vector.broadcast %c0_i32 : i32 to vector<1x128xi32>
    %c0_2 = arith.constant 0 : index
    %c0_3 = arith.constant 0 : index
    %4 = vector.load %arg3[%c0_2, %c0_3] : memref<64x32xf32, #tpu.memory_space<vmem>>, vector<64x32xf32>
    %cst_4 = arith.constant dense<0.000000e+00> : vector<64x128xf32>
    %5 = tpu.matmul %4, %1, %cst_4 {dimension_numbers = #tpu.dot_dimension_numbers<[1], [0], [0], [1], [0, 0, 1, 1], [], []>, precision = #tpu.contract_precision<fp32>} : vector<64x32xf32>, vector<32x128xf32>, vector<64x128xf32> -> vector<64x128xf32>
    %c0_5 = arith.constant 0 : index
    %c0_6 = arith.constant 0 : index
    %6 = vector.load %arg4[%c0_5, %c0_6] : memref<64x1xf32, #tpu.memory_space<vmem>>, vector<64x1xf32>
    %7 = vector.broadcast %6 : vector<64x1xf32> to vector<64x128xf32>
    %8 = arith.subf %7, %5 : vector<64x128xf32>
    %9 = tpu.iota {dimensions = array<i32: 0>} : vector<64x128xi32>
    %c0_i32_7 = arith.constant 0 : i32
    %10 = vector.broadcast %c0_i32_7 : i32 to vector<64x128xi32>
    %11 = arith.addi %9, %10 : vector<64x128xi32>
    %cst_8 = arith.constant dense<0x7F800000> : vector<128xf32>
    %12 = vector.multi_reduction <minimumf>, %8, %cst_8 [0] : vector<64x128xf32> to vector<128xf32>
    %13 = vector.shape_cast %12 : vector<128xf32> to vector<1x128xf32>
    %14 = vector.broadcast %13 : vector<1x128xf32> to vector<64x128xf32>
    %15 = arith.cmpf ole, %8, %14 : vector<64x128xf32>
    %c64_i32 = arith.constant 64 : i32
    %16 = vector.broadcast %c64_i32 : i32 to vector<64x128xi32>
    %17 = arith.select %15, %11, %16 : vector<64x128xi1>, vector<64x128xi32>
    %cst_9 = arith.constant dense<2147483647> : vector<128xi32>
    %18 = vector.multi_reduction <minsi>, %17, %cst_9 [0] : vector<64x128xi32> to vector<128xi32>
    %19 = vector.shape_cast %18 : vector<128xi32> to vector<1x128xi32>
    %20 = arith.cmpf olt, %13, %2 : vector<1x128xf32>
    %21 = arith.select %20, %19, %3 : vector<1x128xi1>, vector<1x128xi32>
    %22 = tpu.iota {dimensions = array<i32: 1>} : vector<1x128xi32>
    %c128_i32 = arith.constant 128 : i32
    %23 = arith.muli %arg1, %c128_i32 : i32
    %24 = vector.broadcast %23 : i32 to vector<1x128xi32>
    %25 = arith.addi %22, %24 : vector<1x128xi32>
    %c8_i32 = arith.constant 8 : i32
    %26 = vector.broadcast %c8_i32 : i32 to vector<1x128xi32>
    %27 = arith.cmpi slt, %25, %26 : vector<1x128xi32>
    %c-1_i32 = arith.constant -1 : i32
    %28 = vector.broadcast %c-1_i32 : i32 to vector<1x128xi32>
    %29 = arith.select %27, %21, %28 : vector<1x128xi1>, vector<1x128xi32>
    %cst_10 = arith.constant 1.000000e+00 : f32
    %30 = vector.broadcast %cst_10 : f32 to vector<1x128xf32>
    %cst_11 = arith.constant 0.000000e+00 : f32
    %31 = vector.broadcast %cst_11 : f32 to vector<32x128xf32>
    %32 = tpu.iota {dimensions = array<i32: 0>} : vector<64x128xi32>
    %c0_i32_12 = arith.constant 0 : i32
    %33 = vector.broadcast %c0_i32_12 : i32 to vector<64x128xi32>
    %34 = arith.addi %32, %33 : vector<64x128xi32>
    %35 = vector.broadcast %29 : vector<1x128xi32> to vector<64x128xi32>
    %36 = arith.cmpi eq, %34, %35 : vector<64x128xi32>
    %37 = arith.extui %36 : vector<64x128xi1> to vector<64x128xi32>
    %38 = arith.sitofp %37 : vector<64x128xi32> to vector<64x128xf32>
    %cst_13 = arith.constant dense<0.000000e+00> : vector<1x64xf32>
    %39 = tpu.matmul %30, %38, %cst_13 {dimension_numbers = #tpu.dot_dimension_numbers<[1], [1], [0], [0], [0, 0, 1, 0], [], []>} : vector<1x128xf32>, vector<64x128xf32>, vector<1x64xf32> -> vector<1x64xf32>
    %c0_14 = arith.constant 0 : index
    %c0_15 = arith.constant 0 : index
    %40 = vector.load %arg3[%c0_14, %c0_15] : memref<64x32xf32, #tpu.memory_space<vmem>>, vector<64x32xf32>
    %cst_16 = arith.constant dense<0.000000e+00> : vector<32x128xf32>
    %41 = tpu.matmul %40, %38, %cst_16 {dimension_numbers = #tpu.dot_dimension_numbers<[0], [0], [1], [1], [0, 1, 1, 1], [], []>, precision = #tpu.contract_precision<fp32>} : vector<64x32xf32>, vector<64x128xf32>, vector<32x128xf32> -> vector<32x128xf32>
    %42 = arith.addf %31, %41 : vector<32x128xf32>
    %c0_17 = arith.constant 0 : index
    %c0_18 = arith.constant 0 : index
    %c0_19 = arith.constant 0 : index
    %43 = vector.load %arg5[%c0_17, %c0_18, %c0_19] : memref<1x32x128xf32, #tpu.memory_space<vmem>>, vector<1x32x128xf32>
    %44 = vector.shape_cast %43 : vector<1x32x128xf32> to vector<32x128xf32>
    %45 = vector.shape_cast %42 : vector<32x128xf32> to vector<1x32x128xf32>
    tpu.vector_store %arg5[%c0_17, %c0_18, %c0_19], %45 {strides = array<i32>} : memref<1x32x128xf32, #tpu.memory_space<vmem>>, vector<1x32x128xf32>,
    %46 = arith.subf %42, %1 : vector<32x128xf32>
    %47 = arith.mulf %46, %46 : vector<32x128xf32>
    %cst_20 = arith.constant dense<0.000000e+00> : vector<32xf32>
    %48 = vector.multi_reduction <add>, %47, %cst_20 [1] : vector<32x128xf32> to vector<32xf32>
    %49 = vector.shape_cast %48 : vector<32xf32> to vector<32x1xf32>
    %cst_21 = arith.constant dense<0.000000e+00> : vector<1xf32>
    %50 = vector.multi_reduction <add>, %49, %cst_21 [0] : vector<32x1xf32> to vector<1xf32>
    %51 = vector.shape_cast %50 : vector<1xf32> to vector<1x1xf32>
    %cst_22 = arith.constant 0.000000e+00 : f32
    %52 = vector.broadcast %cst_22 : f32 to vector<1x63xf32>
    %53 = tpu.concatenate %39, %51, %52 in 1 : vector<1x64xf32>, vector<1x1xf32>, vector<1x63xf32> -> vector<1x128xf32>
    %c0_23 = arith.constant 0 : index
    %c0_24 = arith.constant 0 : index
    %c0_25 = arith.constant 0 : index
    %c0_26 = arith.constant 0 : index
    %54 = vector.load %arg6[%c0_23, %c0_24, %c0_25, %c0_26] : memref<1x1x1x128xf32, #tpu.memory_space<vmem>>, vector<1x1x1x128xf32>
    %55 = vector.shape_cast %54 : vector<1x1x1x128xf32> to vector<1x128xf32>
    %56 = vector.shape_cast %53 : vector<1x128xf32> to vector<1x1x1x128xf32>
    tpu.vector_store %arg6[%c0_23, %c0_24, %c0_25, %c0_26], %56 {strides = array<i32>} : memref<1x1x1x128xf32, #tpu.memory_space<vmem>>, vector<1x1x1x128xf32>,
    return
  }
  func.func @transform_0(%arg0: i32, %arg1: i32) -> (i32, i32, i32) {
    %c0_i32 = arith.constant 0 : i32
    %c0_i32_0 = arith.constant 0 : i32
    return %arg0, %c0_i32, %arg1 : i32, i32, i32
  }
  func.func @transform_1(%arg0: i32, %arg1: i32) -> (i32, i32) {
    %c0_i32 = arith.constant 0 : i32
    %c0_i32_0 = arith.constant 0 : i32
    %c0_i32_1 = arith.constant 0 : i32
    return %c0_i32, %c0_i32_0 : i32, i32
  }
  func.func @transform_2(%arg0: i32, %arg1: i32) -> (i32, i32) {
    %c0_i32 = arith.constant 0 : i32
    %c0_i32_0 = arith.constant 0 : i32
    %c0_i32_1 = arith.constant 0 : i32
    return %c0_i32, %c0_i32_0 : i32, i32
  }
  func.func @transform_3(%arg0: i32, %arg1: i32) -> (i32, i32, i32) {
    %c0_i32 = arith.constant 0 : i32
    %c0_i32_0 = arith.constant 0 : i32
    return %arg0, %c0_i32, %arg1 : i32, i32, i32
  }
  func.func @transform_4(%arg0: i32, %arg1: i32) -> (i32, i32, i32, i32) {
    %c0_i32 = arith.constant 0 : i32
    %c0_i32_0 = arith.constant 0 : i32
    %c0_i32_1 = arith.constant 0 : i32
    return %arg0, %arg1, %c0_i32, %c0_i32_0 : i32, i32, i32, i32
  }
}

module attributes {stable_mosaic.version = 11 : i64} {
  func.func @_vq_kernel(%arg0: i32, %arg1: i32, %arg2: memref<1x32x128xf32, #tpu.memory_space<vmem>>, %arg3: memref<64x32xf32, #tpu.memory_space<vmem>>, %arg4: memref<64x1xf32, #tpu.memory_space<vmem>>, %arg5: memref<1x32x128xf32, #tpu.memory_space<vmem>>, %arg6: memref<1x1x1x128xf32, #tpu.memory_space<vmem>>) attributes {dimension_semantics = [#tpu.dimension_semantics<parallel>, #tpu.dimension_semantics<parallel>], iteration_bounds = array<i64: 2, 1>, scalar_prefetch = 0 : i64, scratch_operands = 0 : i64, tpu.core_type = #tpu.core_type<tc>, window_params = [{transform_indices = @transform_0, window_bounds = array<i64: 1, 32, 128>}, {pipeline_mode = #tpu.pipeline_mode<synchronous>, transform_indices = @transform_1, window_bounds = array<i64: 64, 32>}, {pipeline_mode = #tpu.pipeline_mode<synchronous>, transform_indices = @transform_2, window_bounds = array<i64: 64, 1>}, {transform_indices = @transform_3, window_bounds = array<i64: 1, 32, 128>}, {transform_indices = @transform_4, window_bounds = array<i64: 1, 1, 1, 128>}]} {
    %c0 = arith.constant 0 : index
    %c0_0 = arith.constant 0 : index
    %c0_1 = arith.constant 0 : index
    %0 = vector.load %arg2[%c0, %c0_0, %c0_1] : memref<1x32x128xf32, #tpu.memory_space<vmem>>, vector<1x32x128xf32>
    %1 = vector.shape_cast %0 : vector<1x32x128xf32> to vector<32x128xf32>
    %cst = arith.constant 0x7F800000 : f32
    %2 = vector.broadcast %cst : f32 to vector<1x128xf32>
    %c0_i32 = arith.constant 0 : i32
    %3 = vector.broadcast %c0_i32 : i32 to vector<1x128xi32>
    %c0_2 = arith.constant 0 : index
    %c0_3 = arith.constant 0 : index
    %4 = vector.load %arg3[%c0_2, %c0_3] : memref<64x32xf32, #tpu.memory_space<vmem>>, vector<64x32xf32>
    %cst_4 = arith.constant dense<0.000000e+00> : vector<64x128xf32>
    %5 = tpu.matmul %4, %1, %cst_4 {dimension_numbers = #tpu.dot_dimension_numbers<[1], [0], [0], [1], [0, 0, 1, 1], [], []>, precision = #tpu.contract_precision<fp32>} : vector<64x32xf32>, vector<32x128xf32>, vector<64x128xf32> -> vector<64x128xf32>
    %c0_5 = arith.constant 0 : index
    %c0_6 = arith.constant 0 : index
    %6 = vector.load %arg4[%c0_5, %c0_6] : memref<64x1xf32, #tpu.memory_space<vmem>>, vector<64x1xf32>
    %7 = vector.broadcast %6 : vector<64x1xf32> to vector<64x128xf32>
    %8 = arith.subf %7, %5 : vector<64x128xf32>
    %9 = tpu.iota {dimensions = array<i32: 0>} : vector<64x128xi32>
    %c0_i32_7 = arith.constant 0 : i32
    %10 = vector.broadcast %c0_i32_7 : i32 to vector<64x128xi32>
    %11 = arith.addi %9, %10 : vector<64x128xi32>
    %cst_8 = arith.constant dense<0x7F800000> : vector<128xf32>
    %12 = vector.multi_reduction <minimumf>, %8, %cst_8 [0] : vector<64x128xf32> to vector<128xf32>
    %13 = vector.shape_cast %12 : vector<128xf32> to vector<1x128xf32>
    %14 = vector.broadcast %13 : vector<1x128xf32> to vector<64x128xf32>
    %15 = arith.cmpf ole, %8, %14 : vector<64x128xf32>
    %c64_i32 = arith.constant 64 : i32
    %16 = vector.broadcast %c64_i32 : i32 to vector<64x128xi32>
    %17 = arith.select %15, %11, %16 : vector<64x128xi1>, vector<64x128xi32>
    %cst_9 = arith.constant dense<2147483647> : vector<128xi32>
    %18 = vector.multi_reduction <minsi>, %17, %cst_9 [0] : vector<64x128xi32> to vector<128xi32>
    %19 = vector.shape_cast %18 : vector<128xi32> to vector<1x128xi32>
    %20 = arith.cmpf olt, %13, %2 : vector<1x128xf32>
    %21 = arith.select %20, %19, %3 : vector<1x128xi1>, vector<1x128xi32>
    %22 = tpu.iota {dimensions = array<i32: 1>} : vector<1x128xi32>
    %c128_i32 = arith.constant 128 : i32
    %23 = arith.muli %arg1, %c128_i32 : i32
    %24 = vector.broadcast %23 : i32 to vector<1x128xi32>
    %25 = arith.addi %22, %24 : vector<1x128xi32>
    %c8_i32 = arith.constant 8 : i32
    %26 = vector.broadcast %c8_i32 : i32 to vector<1x128xi32>
    %27 = arith.cmpi slt, %25, %26 : vector<1x128xi32>
    %c-1_i32 = arith.constant -1 : i32
    %28 = vector.broadcast %c-1_i32 : i32 to vector<1x128xi32>
    %29 = arith.select %27, %21, %28 : vector<1x128xi1>, vector<1x128xi32>
    %cst_10 = arith.constant 1.000000e+00 : f32
    %30 = vector.broadcast %cst_10 : f32 to vector<1x128xf32>
    %cst_11 = arith.constant 0.000000e+00 : f32
    %31 = vector.broadcast %cst_11 : f32 to vector<32x128xf32>
    %32 = tpu.iota {dimensions = array<i32: 0>} : vector<64x128xi32>
    %c0_i32_12 = arith.constant 0 : i32
    %33 = vector.broadcast %c0_i32_12 : i32 to vector<64x128xi32>
    %34 = arith.addi %32, %33 : vector<64x128xi32>
    %35 = vector.broadcast %29 : vector<1x128xi32> to vector<64x128xi32>
    %36 = arith.cmpi eq, %34, %35 : vector<64x128xi32>
    %37 = arith.extui %36 : vector<64x128xi1> to vector<64x128xi32>
    %38 = arith.sitofp %37 : vector<64x128xi32> to vector<64x128xf32>
    %cst_13 = arith.constant dense<0.000000e+00> : vector<1x64xf32>
    %39 = tpu.matmul %30, %38, %cst_13 {dimension_numbers = #tpu.dot_dimension_numbers<[1], [1], [0], [0], [0, 0, 1, 0], [], []>} : vector<1x128xf32>, vector<64x128xf32>, vector<1x64xf32> -> vector<1x64xf32>
    %c0_14 = arith.constant 0 : index
    %c0_15 = arith.constant 0 : index
    %40 = vector.load %arg3[%c0_14, %c0_15] : memref<64x32xf32, #tpu.memory_space<vmem>>, vector<64x32xf32>
    %cst_16 = arith.constant dense<0.000000e+00> : vector<32x128xf32>
    %41 = tpu.matmul %40, %38, %cst_16 {dimension_numbers = #tpu.dot_dimension_numbers<[0], [0], [1], [1], [0, 1, 1, 1], [], []>, precision = #tpu.contract_precision<fp32>} : vector<64x32xf32>, vector<64x128xf32>, vector<32x128xf32> -> vector<32x128xf32>
    %42 = arith.addf %31, %41 : vector<32x128xf32>
    %c0_17 = arith.constant 0 : index
    %c0_18 = arith.constant 0 : index
    %c0_19 = arith.constant 0 : index
    %43 = vector.load %arg5[%c0_17, %c0_18, %c0_19] : memref<1x32x128xf32, #tpu.memory_space<vmem>>, vector<1x32x128xf32>
    %44 = vector.shape_cast %43 : vector<1x32x128xf32> to vector<32x128xf32>
    %45 = vector.shape_cast %42 : vector<32x128xf32> to vector<1x32x128xf32>
    tpu.vector_store %arg5[%c0_17, %c0_18, %c0_19], %45 {strides = array<i32>} : memref<1x32x128xf32, #tpu.memory_space<vmem>>, vector<1x32x128xf32>,
    %46 = arith.subf %42, %1 : vector<32x128xf32>
    %47 = arith.mulf %46, %46 : vector<32x128xf32>
    %cst_20 = arith.constant dense<0.000000e+00> : vector<32xf32>
    %48 = vector.multi_reduction <add>, %47, %cst_20 [1] : vector<32x128xf32> to vector<32xf32>
    %49 = vector.shape_cast %48 : vector<32xf32> to vector<32x1xf32>
    %cst_21 = arith.constant dense<0.000000e+00> : vector<1xf32>
    %50 = vector.multi_reduction <add>, %49, %cst_21 [0] : vector<32x1xf32> to vector<1xf32>
    %51 = vector.shape_cast %50 : vector<1xf32> to vector<1x1xf32>
    %cst_22 = arith.constant 0.000000e+00 : f32
    %52 = vector.broadcast %cst_22 : f32 to vector<1x63xf32>
    %53 = tpu.concatenate %39, %51, %52 in 1 : vector<1x64xf32>, vector<1x1xf32>, vector<1x63xf32> -> vector<1x128xf32>
    %c0_23 = arith.constant 0 : index
    %c0_24 = arith.constant 0 : index
    %c0_25 = arith.constant 0 : index
    %c0_26 = arith.constant 0 : index
    %54 = vector.load %arg6[%c0_23, %c0_24, %c0_25, %c0_26] : memref<1x1x1x128xf32, #tpu.memory_space<vmem>>, vector<1x1x1x128xf32>
    %55 = vector.shape_cast %54 : vector<1x1x1x128xf32> to vector<1x128xf32>
    %56 = vector.shape_cast %53 : vector<1x128xf32> to vector<1x1x1x128xf32>
    tpu.vector_store %arg6[%c0_23, %c0_24, %c0_25, %c0_26], %56 {strides = array<i32>} : memref<1x1x1x128xf32, #tpu.memory_space<vmem>>, vector<1x1x1x128xf32>,
    return
  }
  func.func @transform_0(%arg0: i32, %arg1: i32) -> (i32, i32, i32) {
    %c0_i32 = arith.constant 0 : i32
    %c0_i32_0 = arith.constant 0 : i32
    return %arg0, %c0_i32, %arg1 : i32, i32, i32
  }
  func.func @transform_1(%arg0: i32, %arg1: i32) -> (i32, i32) {
    %c0_i32 = arith.constant 0 : i32
    %c0_i32_0 = arith.constant 0 : i32
    %c0_i32_1 = arith.constant 0 : i32
    return %c0_i32, %c0_i32_0 : i32, i32
  }
  func.func @transform_2(%arg0: i32, %arg1: i32) -> (i32, i32) {
    %c0_i32 = arith.constant 0 : i32
    %c0_i32_0 = arith.constant 0 : i32
    %c0_i32_1 = arith.constant 0 : i32
    return %c0_i32, %c0_i32_0 : i32, i32
  }
  func.func @transform_3(%arg0: i32, %arg1: i32) -> (i32, i32, i32) {
    %c0_i32 = arith.constant 0 : i32
    %c0_i32_0 = arith.constant 0 : i32
    return %arg0, %c0_i32, %arg1 : i32, i32, i32
  }
  func.func @transform_4(%arg0: i32, %arg1: i32) -> (i32, i32, i32, i32) {
    %c0_i32 = arith.constant 0 : i32
    %c0_i32_0 = arith.constant 0 : i32
    %c0_i32_1 = arith.constant 0 : i32
    return %arg0, %arg1, %c0_i32, %c0_i32_0 : i32, i32, i32, i32
  }
}

</mosaic_0001>

<bundles_post_ra>
// kernel: tpu_custom_call.1
= control target key start
LH: loop header
LB: loop body
LE: loop exit
PB: predicated region body
PF: predicated region fallthrough
CT: control target
= control target key end

     0   :  { %10 = vsyncpa [#allocation3], 0  ;;  %s3854_s0 = inlined_call_operand.vmem [shape: f32[2,32,128], index: 0, kind: input, shape index: {}]   ;;  %s3855_s1 = inlined_call_operand.vmem [shape: f32[64,32], index: 1, kind: input, shape index: {}]   ;;  %s3856_s2 = inlined_call_operand.vmem [shape: f32[64,1], index: 2, kind: input, shape index: {}]   ;;  %s3857_s3 = inlined_call_operand.hbm [shape: f32[2,32,128], index: 3, kind: output, shape index: {0}]   ;;  %s3858_s4 = inlined_call_operand.hbm [shape: f32[2,1,1,128], index: 4, kind: output, shape index: {1}]  }
   0x1   :  { %12 = vsyncpa [#allocation3 + $0x1], 0 }
   0x2   :  { %13 = vsyncpa [#allocation5], 0 }
   0x3   :  { %15 = vsyncpa [#allocation5 + $0x1], 0  ;;  %s3073_s15 = smov 0   ;;  %s3075_s16 = smov 0  }
   0x4   :  { %s3077_s17 = smov 0   ;;  %s3079_s18 = smov 0  }
   0x5   :  { %s3081_s19 = smov 0   ;;  %s3083_s20 = smov 0  }
   0x6 LB: > { %s2160_s21 = sadd.s32 4294967295, %s3036_s20   ;;  %s2161_s22 = sadd.s32 4294967294, %s3036_s20   ;;  %s3036_s20 = sphi %s3083_s20, %s21_s20   ;;  %s3032_s19 = sphi %s3081_s19, %s3873_s19   ;;  %s3028_s18 = sphi %s3079_s18, %s3872_s18   ;;  %s3024_s17 = sphi %s3077_s17, %s3871_s17   ;;  %s3020_s16 = sphi %s3075_s16, %s3870_s16   ;;  %s3016_s15 = sphi %s3073_s15, %s3869_s15  }
   0x7   : > { %s33_s23 = sadd.s32 1, %s3032_s19  ;;  %s112_s24 = sadd.s32 1, %s3024_s17 }
   0x8   : > { %p35_p0 = scmp.ge.s32.totalorder %s33_s23, 2  ;;  %p122_p1 = scmp.ne.s32.totalorder %s3024_s17, %s3020_s16 }
   0x9   : > { %p123_p2 = scmp.eq.s32.totalorder %s2160_s21, 1  ;;  %p128_p3 = scmp.ne.s32.totalorder %s3020_s16, %s3016_s15 }
   0xa   : > { %s3875_s23 = smov (%p35_p0, %s33_s23), 0  ;;  %p129_p5 = scmp.eq.s32.totalorder %s2161_s22, 1 }
   0xb   : > { %p3113_p4 = por %p123_p2, %p122_p1  ;;  %s107_s26 = ssub.s32 %s3032_s19, %s3875_s23 }
   0xc   : > { %p2164_p6 = scmp.ge.s32.totalorder %s3036_s20, 1  ;;  %p110_p7 = scmp.eq.s32.totalorder %s107_s26, 0 }
   0xd   : > { %p3120_p8 = por %p129_p5, %p128_p3  ;;  %p192_p9 = scmp.lt.s32.totalorder %s3036_s20, 3 }
   0xe   : > { %s3126_s28 = scalar_select %p110_p7, %s3024_s17, %s112_s24  }
   0xf   : > { %p193_p10 = pnand %p2164_p6, %p192_p9 }
  0x10   : > { %p225_p11 = scmp.lt.s32.totalorder (!%p193_p10), %s3028_s18, 1  ;;  %v3132_v0 = vld [vmem:[%s3855_s1] sm:$0xff] (!%p193_p10)  ;;  %vm245_vm0 = vcmask (!%p193_p10), 261120   ;;  %v3137_v1 = vld [vmem:[%s3855_s1 + $0x8] sm:$0xff] (!%p193_p10)  ;;  %v3142_v2 = vld [vmem:[%s3855_s1 + $0x10] sm:$0xff] (!%p193_p10)  ;;  %v3038_v9 = vmov (!%p193_p10), 0  }
  0x11   : > { %196 = sbr.rel (%p193_p10) target bundleno = 905 (0x389), region = 32  ;;  %v247_v3 = vsel (!%p193_p10), %vm245_vm0, %v3132_v0, 0  ;;  %v250_v4 = vsel (!%p193_p10), %vm245_vm0, %v3137_v1, 0  ;;  %v253_v5 = vsel (!%p193_p10), %vm245_vm0, %v3142_v2, 0  ;;  %v3153_v6 = vld [vmem:[%s3855_s1 + $0x18] sm:$0xff] (!%p193_p10)  ;;  %v3158_v7 = vld [vmem:[%s3855_s1 + $0x20] sm:$0xff] (!%p193_p10)  ;;  %2925 = vset.pattern.permute.xlu1 (!%p193_p10), %v3038_v9  ;;  %2924 = vset.pattern.permute.xlu0 (!%p193_p10), %v3038_v9 }
  0x12   : > { %v3163_v8 = vld [vmem:[%s3855_s1 + $0x28] sm:$0xff] (!%p193_p10)  ;;  %v3168_v10 = vand.u32 (!%p193_p10), 4294901760, %v247_v3  ;;  %v3170_v11 = vand.u32 (!%p193_p10), 4294901760, %v250_v4  ;;  %v3172_v12 = vand.u32 (!%p193_p10), 4294901760, %v253_v5  ;;  %v256_v13 = vsel (!%p193_p10), %vm245_vm0, %v3153_v6, 0  ;;  %v3179_v14 = vld [vmem:[%s3855_s1 + $0x30] sm:$0xff] (!%p193_p10) }
  0x13   : > { %v3181_v15 = vand.u32 (!%p193_p10), 4294901760, %v256_v13  ;;  %v259_v16 = vsel (!%p193_p10), %vm245_vm0, %v3158_v7, 0  ;;  %v262_v17 = vsel (!%p193_p10), %vm245_vm0, %v3163_v8, 0  ;;  %v1058_v18 = vld [vmem:[%s3856_s2 + $0x10] sm:$0xff] (!%p193_p10)  ;;  %v1056_v23 = vld [vmem:[%s3856_s2] sm:$0xff] (!%p193_p10)  ;;  %v265_v26 = vsel (!%p193_p10), %vm245_vm0, %v3179_v14, 0 }
  0x14   : > { %v3191_v19 = vsub.f32 (!%p193_p10), %v247_v3, %v3168_v10  ;;  %v3194_v20 = vsub.f32 (!%p193_p10), %v250_v4, %v3170_v11  ;;  %v3197_v21 = vsub.f32 (!%p193_p10), %v253_v5, %v3172_v12  ;;  %v3199_v22 = vand.u32 (!%p193_p10), 4294901760, %v259_v16  ;;  %1076 = vperm.xlu1 (!%p193_p10), %2925, %v1058_v18   ;;  %v3217_v27 = vld [vmem:[%s3855_s1 + $0x38] sm:$0xff] (!%p193_p10)  ;;  %1066 = vperm.xlu0 (!%p193_p10), %2924, %v1056_v23   ;;  %v1057_v29 = vld [vmem:[%s3856_s2 + $0x8] sm:$0xff] (!%p193_p10)  ;;  %v1060_v57 = vld [vmem:[%s3856_s2 + $0x20] sm:$0xff] (!%p193_p10)  ;;  %s3760_s8 = sand.u32 (!%p193_p10), 1, %s3020_s16   ;;  %s2215_s12 = sshll.u32 (!%p193_p10), %s3028_s18, 9 }
  0x15   : > { %v3208_v24 = vsub.f32 (!%p193_p10), %v256_v13, %v3181_v15  ;;  %v3210_v25 = vand.u32 (!%p193_p10), 4294901760, %v262_v17  ;;  %v1059_v28 = vld [vmem:[%s3856_s2 + $0x18] sm:$0xff] (!%p193_p10)  ;;  %v3246_v43 = vand.u32 (!%p193_p10), 4294901760, %v265_v26  ;;  %v268_v44 = vsel (!%p193_p10), %vm245_vm0, %v3217_v27, 0  ;;  %v1061_v56 = vld [vmem:[%s3856_s2 + $0x28] sm:$0xff] (!%p193_p10)  ;;  %s2021_s22 = scalar_lea.sflag (!%p193_p10), [#allocation3], %s3760_s8 }
  0x16   : > { %v341_v33 = vand.u32 (!%p193_p10), 4294901760, %v3191_v19  ;;  %v351_v34 = vand.u32 (!%p193_p10), 4294901760, %v3194_v20  ;;  %v361_v35 = vand.u32 (!%p193_p10), 4294901760, %v3197_v21  ;;  %v3240_v40 = vsub.f32 (!%p193_p10), %v259_v16, %v3199_v22  ;;  %s3044_s26 = smov (!%p193_p10), [#allocation2]  }
  0x17   : > { %v371_v48 = vand.u32 (!%p193_p10), 4294901760, %v3208_v24  ;;  %v3279_v58 = vsub.f32 (!%p193_p10), %v262_v17, %v3210_v25  ;;  %v3287_v61 = vand.u32 (!%p193_p10), 4294901760, %v268_v44  ;;  %v3300_v4 = vsub.f32 (!%p193_p10), %v265_v26, %v3246_v43  ;;  %v1063_v26 = vld [vmem:[%s3856_s2 + $0x38] sm:$0xff] (!%p193_p10)  ;;  %s2930_s29 = sshll.u32 (!%p193_p10), %s3044_s26, 4  ;;  %s2931_s29 = int_to_ptr.vmem [resolvable:$false] %s2930_s29 }
  0x18   : > { %s226_s21 = scalar_select %p225_p11, %s3028_s18, 1  ;;  %v342_v42 = vsub.f32 %v3191_v19, %v341_v33  ;;  %1081 = vperm.xlu1 %2925, %v1059_v28   ;;  %1071 = vperm.xlu0 %2924, %v1057_v29   ;;  %v352_v51 = vsub.f32 %v3194_v20, %v351_v34  ;;  %v362_v52 = vsub.f32 %v3197_v21, %v361_v35  ;;  %v381_v55 = vand.u32 4294901760, %v3240_v40  ;;  %v1062_v29 = vld [vmem:[%s3856_s2 + $0x30] sm:$0xff] }
  0x19   : > { %v372_v3 = vsub.f32 %v3208_v24, %v371_v48  ;;  %v391_v23 = vand.u32 4294901760, %v3279_v58  ;;  %v3306_v28 = vsub.f32 %v268_v44, %v3287_v61  ;;  %vm3040_vm1 = vmmov 0  }
  0x1a   : > { %s2214_s30 = sshll.u32 %s226_s21, 5  ;;  %v343_v50 = vand.u32 4294901760, %v342_v42  ;;  %v353_v5 = vand.u32 4294901760, %v352_v51  ;;  %v363_v9 = vand.u32 4294901760, %v362_v52  ;;  %vm1308_vm2 = vcmask 523264   ;;  %s3773_s21 = scalar_lea.hbm %s3857_s3, %s2215_s12 }
  0x1b   : > { %s232_s9 = scalar_lea.vmem %s3854_s0, %s2214_s30  ;;  %v373_v51 = vand.u32 4294901760, %v372_v3  ;;  %v392_v52 = vsub.f32 %v3279_v58, %v391_v23  ;;  %s2932_s30 = scalar_lea.vmem %s2931_s29, 1024 }
  0x1c   : > { %v3225_v30 = vld [vmem:[%s232_s9] sm:$0xff]  ;;  %v3227_v31 = vld [vmem:[%s232_s9 + $0x8] sm:$0xff]  ;;  %v3229_v32 = vld [vmem:[%s232_s9 + $0x10] sm:$0xff]  ;;  %2377 = vmatprep.mubr.f32.mxu0 %v343_v50  ;;  %1091 = vperm.xlu1 %2925, %v1061_v56   ;;  %v411_v56 = vand.u32 4294901760, %v3306_v28 }
  0x1d   : > { %v271_v36 = vand.u32 4294901760, %v3225_v30  ;;  %v274_v37 = vand.u32 4294901760, %v3227_v31  ;;  %v3236_v38 = vld [vmem:[%s232_s9 + $0x18] sm:$0xff]  ;;  %v277_v39 = vand.u32 4294901760, %v3229_v32  ;;  %1086 = vperm.xlu0 %2924, %v1060_v57   ;;  %v393_v3 = vand.u32 4294901760, %v392_v52  ;;  %s2165_s9 = sshll.u32 %s3760_s8, 5 }
  0x1e   : > { %v280_v41 = vand.u32 4294901760, %v3236_v38  ;;  %s218_s10 = scalar_lea.vmem [#allocation2], %s2165_s9 }
  0x1f   : > { %v3250_v45 = vpack.c.bf16 %v274_v37, %v271_v36  ;;  %v3253_v46 = vsub.f32 %v3225_v30, %v271_v36  ;;  %v3256_v47 = vsub.f32 %v3227_v31, %v274_v37  ;;  %v3282_v59 = vsub.f32 %v3229_v32, %v277_v39  ;;  %s2039_s11 = sshll.u32 %s218_s10, 4  ;;  %s3767_s11 = int_to_ptr.vmem [resolvable:$true] %s2039_s11 }
  0x20   : > { %v3259_v49 = vpack.c.bf16 %v280_v41, %v277_v39  ;;  %v3285_v60 = vsub.f32 %v3236_v38, %v280_v41  ;;  %v382_v36 = vsub.f32 %v3240_v40, %v381_v55  ;;  %v401_v41 = vand.u32 4294901760, %v3300_v4  ;;  %1101 = vperm.xlu1 %2925, %v1063_v26   ;;  %s2926_s24 = scalar_lea.vmem %s3767_s11, 512  ;;  %p2933_p1 = scmp.lt.s32.totalorder %s3767_s11, %s2931_s29 }
  0x21   : > { %2641 = vmatprep.subr.bf16.mxu0 %v3250_v45  ;;  %v422_v53 = vand.u32 4294901760, %v3253_v46  ;;  %v429_v54 = vand.u32 4294901760, %v3256_v47  ;;  %v436_v13 = vand.u32 4294901760, %v3282_v59  ;;  %1096 = vperm.xlu0 %2924, %v1062_v29   ;;  %p2927_p12 = scmp.ne.s32.totalorder %s3767_s11, %s2926_s24  ;;  %p2934_p2 = scmp.lt.s32.totalorder %s2932_s30, %s2926_s24 }
  0x22   : > { %2643 = vmatpush3.bf16.msra.mxu0 %v3250_v45  ;;  %v443_v16 = vand.u32 4294901760, %v3285_v60  ;;  %v383_v57 = vand.u32 4294901760, %v382_v36  ;;  %v2660_v26 = vpack.c.bf16 %v3285_v60, %v3282_v59 }
  0x23   : > { %2645 = vmatprep.subr.bf16.mxu0 %v3259_v49  ;;  %v423_v62 = vsub.f32 %v3253_v46, %v422_v53  ;;  %v430_v63 = vsub.f32 %v3256_v47, %v429_v54  ;;  %v437_v37 = vsub.f32 %v3282_v59, %v436_v13  ;;  %v2672_v29 = vpack.c.bf16 %v429_v54, %v422_v53  ;;  %p2928_p13 = pnand %p2927_p12, %p3113_p4  ;;  %p2935_p3 = por %p2934_p2, %p2933_p1 }
  0x24   : > { %v444_v39 = vsub.f32 %v3285_v60, %v443_v16 }
  0x25   : > { %v424_v17 = vand.u32 4294901760, %v423_v62  ;;  %v431_v18 = vand.u32 4294901760, %v430_v63  ;;  %v438_v44 = vand.u32 4294901760, %v437_v37  ;;  %v402_v63 = vsub.f32 %v3300_v4, %v401_v41  ;;  %p2929_p0 = pneg %p2928_p13 }
  0x26   : > { %2647 = vmatpush3.bf16.msra.mxu0 %v3259_v49  ;;  %v445_v50 = vand.u32 4294901760, %v444_v39  ;;  %v1112_v39 = vlaneseq }
  0x27   : > { %v2648_v42 = vpack.c.bf16 %v431_v18, %v424_v17  ;;  %v2656_v17 = vpack.c.bf16 %v3256_v47, %v3253_v46  ;;  %v403_v18 = vand.u32 4294901760, %v402_v63  ;;  %p2936_p5 = pnand %p2935_p3, %p2929_p0 }
  0x28   : > { %v2652_v62 = vpack.c.bf16 %v445_v50, %v438_v44  ;;  %v3423_v44 = vshrl.u32 %v1112_v39, 7 }
  0x29   : > { %2378 = vmatmul.mubr.f32.vlgmr.msra.gmra.mrb[0].mxu0 %v353_v5  ;;  %2649 = vmatprep.subr.bf16.mxu0 %v2648_v42  ;;  %v412_v5 = vsub.f32 %v3306_v28, %v411_v56 }
  0x2a   : > { %2651 = vmatpush3.bf16.msra.mxu0 %v2648_v42  ;;  %2380 = vmatprep.mubr.f32.mxu0 %v363_v9  ;;  %v3426_v52 = vadd.s32 8, %v3423_v44  ;;  %v3435_v63 = vadd.s32 32, %v3423_v44 }
  0x2b   : > { %2653 = vmatprep.subr.bf16.mxu0 %v2652_v62  ;;  %v413_v9 = vand.u32 4294901760, %v412_v5  ;;  %v3444_v5 = vadd.s32 56, %v3423_v44 }
  0x2d   : > { %2381 = vmatmul.mubr.f32.gmra.mrb[2].mxu0 %v373_v51 }
  0x2e   : > { %2383 = vmatprep.mubr.f32.mxu0 %v383_v57  ;;  %2655 = vmatpush3.bf16.msra.mxu0 %v2652_v62  ;;  %v3432_v57 = vadd.s32 24, %v3423_v44 }
  0x2f   : > { %2657 = vmatprep.subr.bf16.mxu0 %v2656_v17 }
  0x31   : > { %2384 = vmatmul.mubr.f32.gmra.mrb[4].mxu0 %v393_v3  ;;  %v3441_v3 = vadd.s32 48, %v3423_v44 }
  0x32   : > { %2386 = vmatprep.mubr.f32.mxu0 %v403_v18 }
  0x35   : > { %2387 = vmatmul.mubr.f32.gmra.mrb[6].mxu0 %v413_v9 }
  0x36   : > { %2397 = vmatprep.mubr.f32.mxu0 %v3168_v10 }
  0x39   : > { %2398 = vmatmul.mubr.f32.vlgmr.msra.gmra.mrb[0].mxu0 %v3170_v11 }
  0x3a   : > { %2659 = vmatpush3.bf16.msra.mxu0 %v2656_v17  ;;  %2400 = vmatprep.mubr.f32.mxu0 %v3172_v12  ;;  %v3438_v17 = vadd.s32 40, %v3423_v44 }
  0x3b   : > { %2661 = vmatprep.subr.bf16.mxu0 %v2660_v26 }
  0x3d   : > { %2401 = vmatmul.mubr.f32.gmra.mrb[2].mxu0 %v3181_v15 }
  0x3e   : > { %2403 = vmatprep.mubr.f32.mxu0 %v3199_v22  ;;  %2663 = vmatpush3.bf16.msra.mxu0 %v2660_v26 }
  0x3f   : > { %2665 = vmatprep.subr.bf16.mxu0 %v3250_v45  ;;  %1276 = vxpose.xlu0.b32.start [1/8] (short) (narrow) %v3132_v0, 32  ;;  %v2676_v0 = vpack.c.bf16 %v443_v16, %v436_v13 }
  0x41   : > { %2404 = vmatmul.mubr.f32.gmra.mrb[4].mxu0 %v3210_v25 }
  0x42   : > { %2406 = vmatprep.mubr.f32.mxu0 %v3246_v43 }
  0x43   : > { %1277 = vxpose.xlu0.b32.cont [2/8] (short) (narrow) %v3137_v1, 32  ;;  %v3039_v1 = vmov 0.0|0.0  }
  0x44   : > { %2688 = vmatprep.subr.bf16.mxu1 %v3039_v1 }
  0x45   : > { %2407 = vmatmul.mubr.f32.gmra.mrb[6].mxu0 %v3287_v61 }
  0x46   : > { %2417 = vmatprep.mubr.f32.mxu0 %v3191_v19 }
  0x47   : > { %1278 = vxpose.xlu0.b32.cont [3/8] (short) (narrow) %v3142_v2, 32 }
  0x49   : > { %2418 = vmatmul.mubr.f32.vlgmr.msra.gmra.mrb[0].mxu0 %v3194_v20 }
  0x4a   : > { %2667 = vmatpush3.bf16.msra.mxu0 %v3250_v45  ;;  %2420 = vmatprep.mubr.f32.mxu0 %v3197_v21 }
  0x4b   : > { %2669 = vmatprep.subr.bf16.mxu0 %v3259_v49  ;;  %1279 = vxpose.xlu0.b32.cont [4/8] (short) (narrow) %v3153_v6, 32 }
  0x4d   : > { %2421 = vmatmul.mubr.f32.gmra.mrb[2].mxu0 %v3208_v24 }
  0x4e   : > { %2423 = vmatprep.mubr.f32.mxu0 %v3240_v40  ;;  %2671 = vmatpush3.bf16.msra.mxu0 %v3259_v49 }
  0x4f   : > { %2673 = vmatprep.subr.bf16.mxu0 %v2672_v29  ;;  %1280 = vxpose.xlu0.b32.cont [5/8] (short) (narrow) %v3158_v7, 32 }
  0x51   : > { %2424 = vmatmul.mubr.f32.gmra.mrb[4].mxu0 %v3279_v58 }
  0x52   : > { %2426 = vmatprep.mubr.f32.mxu0 %v3300_v4 }
  0x53   : > { %1281 = vxpose.xlu0.b32.cont [6/8] (short) (narrow) %v3163_v8, 32  ;;  %v3041_v8 = vmov 0.0  }
  0x54   : > { %2505 = vmatprep.mubr.msk.f32.mxu1 %vm3040_vm1, %v3041_v8 }
  0x55   : > { %2427 = vmatmul.mubr.f32.gmra.mrb[6].mxu0 %v3306_v28 }
  0x56   : > { %2437 = vmatprep.mubr.f32.mxu0 %v341_v33 }
  0x57   : > { %1282 = vxpose.xlu0.b32.cont [7/8] (short) (narrow) %v3179_v14, 32 }
  0x59   : > { %2438 = vmatmul.mubr.f32.vlgmr.msra.gmra.mrb[0].mxu0 %v351_v34 }
  0x5a   : > { %2675 = vmatpush3.bf16.msra.mxu0 %v2672_v29  ;;  %2440 = vmatprep.mubr.f32.mxu0 %v361_v35 }
  0x5b   : > { %2677 = vmatprep.subr.bf16.mxu0 %v2676_v0  ;;  %1283 = vxpose.xlu0.b32.end [8/8] (short) (narrow) %v3217_v27, 32 }
  0x5d   : > { %2441 = vmatmul.mubr.f32.gmra.mrb[2].mxu0 %v371_v48 }
  0x5e   : > { %2443 = vmatprep.mubr.f32.mxu0 %v381_v55  ;;  %2679 = vmatpush3.bf16.msra.mxu0 %v2676_v0 }
  0x5f   : > { %2681 = vmatprep.subr.bf16.mxu0 %v3250_v45 }
  0x61   : > { %2444 = vmatmul.mubr.f32.gmra.mrb[4].mxu0 %v391_v23 }
  0x62   : > { %2446 = vmatprep.mubr.f32.mxu0 %v401_v41 }
  0x65   : > { %2447 = vmatmul.mubr.f32.gmra.mrb[6].mxu0 %v411_v56  ;;  %v3429_v56 = vadd.s32 16, %v3423_v44 }
  0x66   : > { %2457 = vmatprep.mubr.f32.mxu0 %v3168_v10 }
  0x69   : > { %2458 = vmatmul.mubr.f32.vlgmr.msra.gmra.mrb[0].mxu0 %v3170_v11 }
  0x6a   : > { %2683 = vmatpush3.bf16.msra.mxu0 %v3250_v45  ;;  %2460 = vmatprep.mubr.f32.mxu0 %v3172_v12 }
  0x6b   : > { %2685 = vmatprep.subr.bf16.mxu0 %v3259_v49 }
  0x6d   : > { %2461 = vmatmul.mubr.f32.gmra.mrb[2].mxu0 %v3181_v15 }
  0x6e   : > { %2463 = vmatprep.mubr.f32.mxu0 %v3199_v22  ;;  %2687 = vmatpush3.bf16.msra.mxu0 %v3259_v49 }
  0x71   : > { %2464 = vmatmul.mubr.f32.gmra.mrb[4].mxu0 %v3210_v25 }
  0x72   : > { %2466 = vmatprep.mubr.f32.mxu0 %v3246_v43 }
  0x75   : > { %2467 = vmatmul.mubr.f32.gmra.mrb[6].mxu0 %v3287_v61 }
  0x76   : > { %2477 = vmatprep.mubr.f32.mxu0 %v3168_v10 }
  0x79   : > { %2478 = vmatmul.mubr.f32.vlgmr.msra.gmra.mrb[0].mxu0 %v3170_v11 }
  0x7a   : > { %2480 = vmatprep.mubr.f32.mxu0 %v3172_v12 }
  0x7d   : > { %2481 = vmatmul.mubr.f32.gmra.mrb[2].mxu0 %v3181_v15 }
  0x7e   : > { %2483 = vmatprep.mubr.f32.mxu0 %v3199_v22 }
  0x81   : > { %2484 = vmatmul.mubr.f32.gmra.mrb[4].mxu0 %v3210_v25 }
  0x82   : > { %2486 = vmatprep.mubr.f32.mxu0 %v3246_v43 }
  0x85   : > { %2487 = vmatmul.mubr.f32.gmra.mrb[6].mxu0 %v3287_v61 }
  0x93   : > { %v1067_v2 = vpop.permute.xlu0 %1066  ;;  %v1077_v22 = vpop.permute.xlu1 %1076 }
  0x97   : > { %v1072_v6 = vpop.permute.xlu0 %1071  ;;  %v1082_v24 = vpop.permute.xlu1 %1081 }
  0x9b   : > { %v1092_v35 = vpop.permute.xlu1 %1091 }
  0x9c   : > { %v1087_v7 = vpop.permute.xlu0 %1086 }
  0x9f   : > { %v1102_v53 = vpop.permute.xlu1 %1101 }
  0xa0   : > { %v1097_v10 = vpop.permute.xlu0 %1096 }
  0xbf   : > { %v1292_v11 = vpop.trf.xlu0 }
  0xc0   : > { %v1310_v12 = vsel %vm1308_vm2, %v1292_v11, 0 }
  0xc1   : > { %v3414_v14 = vand.u32 4294901760, %v1310_v12 }
  0xc3   : > { %v3417_v15 = vsub.f32 %v1310_v12, %v3414_v14 }
  0xc5   : > { %v1396_v19 = vand.u32 4294901760, %v3417_v15 }
  0xc7   : > { %v1397_v20 = vsub.f32 %v3417_v15, %v1396_v19 }
  0xc9   : > { %v1398_v21 = vand.u32 4294901760, %v1397_v20 }
  0xcb   : > { %2524 = vmatprep.mubr.f32.mxu0 %v1398_v21 }
 0x14c   : > { %v2479_v25 = vpop.f32.mrb[0].mxu0 }
 0x14d   : > { %v1010_v27 = vpop.f32.mrb[1].mxu0  ;;  %v1105_v43 = vsub.f32 %v1072_v6, %v2479_v25 }
 0x14e   : > { %v1104_v47 = vsub.f32 %v1067_v2, %v1010_v27  ;;  %v1293_v27 = vpop.trf.xlu0 }
 0x150   : > { %v2482_v33 = vpop.f32.mrb[2].mxu0 }
 0x151   : > { %v1022_v34 = vpop.f32.mrb[3].mxu0  ;;  %v1107_v58 = vsub.f32 %v1082_v24, %v2482_v33 }
 0x152   : > { %v1106_v61 = vsub.f32 %v1077_v22, %v1022_v34 }
 0x154   : > { %v2485_v40 = vpop.f32.mrb[4].mxu0 }
 0x155   : > { %v1109_v45 = vsub.f32 %v1092_v35, %v2485_v40  ;;  %v1034_v46 = vpop.f32.mrb[5].mxu0  ;;  %v1176_v35 = vand.u32 127, %v1112_v39 }
 0x156   : > { %v1108_v48 = vsub.f32 %v1087_v7, %v1034_v46 }
 0x157   : > { %v1122_v49 = vmin.f32 %v1105_v43, %v1109_v45 }
 0x158   : > { %v1121_v54 = vmin.f32 %v1104_v47, %v1108_v48  ;;  %v2488_v55 = vpop.f32.mrb[6].mxu0 }
 0x159   : > { %v1111_v59 = vsub.f32 %v1102_v53, %v2488_v55  ;;  %v1046_v60 = vpop.f32.mrb[7].mxu0 }
 0x15a   : > { %v1125_v4 = vmin.f32 %v1121_v54, %v1122_v49  ;;  %v1110_v13 = vsub.f32 %v1097_v10, %v1046_v60 }
 0x15b   : > { %v1124_v16 = vmin.f32 %v1107_v58, %v1111_v59 }
 0x15c   : > { %v1123_v23 = vmin.f32 %v1106_v61, %v1110_v13 }
 0x15e   : > { %v1126_v28 = vmin.f32 %v1123_v23, %v1124_v16 }
 0x160   : > { %v1127_v36 = vmin.f32 %v1125_v4, %v1126_v28 }
 0x162   : > { %v1128_v37 = vrot.slane %v1127_v36, 4 }
 0x164   : > { %v1129_v41 = vmin.f32 %v1127_v36, %v1128_v37 }
 0x166   : > { %v1130_v42 = vrot.slane %v1129_v41, 2 }
 0x168   : > { %v1131_v50 = vmin.f32 %v1129_v41, %v1130_v42 }
 0x16a   : > { %v1132_v51 = vrot.slane %v1131_v50, 1 }
 0x16c   : > { %v1133_v62 = vmin.f32 %v1131_v50, %v1132_v51 }
 0x16e   : > { %vm1134_vm3 = vcmp.le.f32.partialorder %v1104_v47, %v1133_v62  ;;  %vm1135_vm4 = vcmp.le.f32.partialorder %v1105_v43, %v1133_v62  ;;  %vm1136_vm5 = vcmp.le.f32.partialorder %v1106_v61, %v1133_v62  ;;  %vm1137_vm6 = vcmp.le.f32.partialorder %v1107_v58, %v1133_v62 }
 0x16f   : > { %vm1138_vm7 = vcmp.le.f32.partialorder %v1108_v48, %v1133_v62  ;;  %vm1139_vm8 = vcmp.le.f32.partialorder %v1109_v45, %v1133_v62  ;;  %vm1140_vm9 = vcmp.le.f32.partialorder %v1110_v13, %v1133_v62  ;;  %vm1141_vm10 = vcmp.le.f32.partialorder %v1111_v59, %v1133_v62  ;;  %v1294_v45 = vpop.trf.xlu0 }
 0x170   : > { %v1142_v18 = vsel %vm1134_vm3, %v3423_v44, 64  ;;  %v1143_v9 = vsel %vm1135_vm4, %v3426_v52, 64  ;;  %v1144_v26 = vsel %vm1136_vm5, %v3429_v56, 64  ;;  %v1145_v29 = vsel %vm1137_vm6, %v3432_v57, 64 }
 0x171   : > { %v1146_v0 = vsel %vm1138_vm7, %v3435_v63, 64  ;;  %v1147_v2 = vsel %vm1139_vm8, %v3438_v17, 64  ;;  %v1148_v6 = vsel %vm1140_vm9, %v3441_v3, 64  ;;  %v1149_v7 = vsel %vm1141_vm10, %v3444_v5, 64 }
 0x172   : > { %vm1150_vm11 = vcmp.lt.s32.totalorder %v1142_v18, %v1146_v0  ;;  %vm1152_vm12 = vcmp.lt.s32.totalorder %v1143_v9, %v1147_v2  ;;  %vm1154_vm13 = vcmp.lt.s32.totalorder %v1144_v26, %v1148_v6  ;;  %vm1156_vm14 = vcmp.lt.s32.totalorder %v1145_v29, %v1149_v7 }
 0x173   : > { %v1151_v10 = vsel %vm1150_vm11, %v1142_v18, %v1146_v0  ;;  %v1153_v11 = vsel %vm1152_vm12, %v1143_v9, %v1147_v2  ;;  %v1155_v12 = vsel %vm1154_vm13, %v1144_v26, %v1148_v6  ;;  %v1157_v20 = vsel %vm1156_vm14, %v1145_v29, %v1149_v7  ;;  %v1295_v55 = vpop.trf.xlu0 }
 0x174   : > { %vm1158_vm15 = vcmp.lt.s32.totalorder %v1151_v10, %v1153_v11  ;;  %vm1160_vm0 = vcmp.lt.s32.totalorder %v1155_v12, %v1157_v20  ;;  %vm1180_vm6 = vcmp.lt.s32.totalorder %v1176_v35, 8  ;;  %vm1173_vm7 = vcmp.lt.f32.partialorder %v1133_v62, inf }
 0x175   : > { %v1159_v21 = vsel %vm1158_vm15, %v1151_v10, %v1153_v11  ;;  %v1161_v22 = vsel %vm1160_vm0, %v1155_v12, %v1157_v20  ;;  %v1313_v47 = vsel %vm1308_vm2, %v1293_v27, 0  ;;  %v1316_v54 = vsel %vm1308_vm2, %v1294_v45, 0 }
 0x176   : > { %vm1162_vm1 = vcmp.lt.s32.totalorder %v1159_v21, %v1161_v22  ;;  %v3457_v53 = vand.u32 4294901760, %v1313_v47  ;;  %v3478_v59 = vand.u32 4294901760, %v1316_v54  ;;  %v1319_v60 = vsel %vm1308_vm2, %v1295_v55, 0 }
 0x177   : > { %v1163_v24 = vsel %vm1162_vm1, %v1159_v21, %v1161_v22  ;;  %v3042_v61 = vmov 1.0|1.0   ;;  %v3514_v23 = vand.u32 4294901760, %v1319_v60 }
 0x178   : > { %v1164_v25 = vrot.slane %v1163_v24, 4  ;;  %v3488_v4 = vsub.f32 %v1313_v47, %v3457_v53  ;;  %v3505_v16 = vsub.f32 %v1316_v54, %v3478_v59 }
 0x179   : > { %v3526_v39 = vsub.f32 %v1319_v60, %v3514_v23  ;;  %v3043_v60 = vmov 1.0  }
 0x17a   : > { %vm1165_vm3 = vcmp.lt.s32.totalorder %v1163_v24, %v1164_v25  ;;  %v1406_v37 = vand.u32 4294901760, %v3488_v4  ;;  %v1416_v42 = vand.u32 4294901760, %v3505_v16 }
 0x17b   : > { %v1166_v33 = vsel %vm1165_vm3, %v1163_v24, %v1164_v25 }
 0x17c   : > { %v1167_v34 = vrot.slane %v1166_v33, 2  ;;  %v1407_v51 = vsub.f32 %v3488_v4, %v1406_v37  ;;  %v1417_v18 = vsub.f32 %v3505_v16, %v1416_v42 }
 0x17e   : > { %vm1168_vm4 = vcmp.lt.s32.totalorder %v1166_v33, %v1167_v34  ;;  %v1408_v2 = vand.u32 4294901760, %v1407_v51 }
 0x17f   : > { %v1169_v40 = vsel %vm1168_vm4, %v1166_v33, %v1167_v34 }
 0x180   : > { %v1170_v43 = vrot.slane %v1169_v40, 1 }
 0x182   : > { %vm1171_vm5 = vcmp.lt.s32.totalorder %v1169_v40, %v1170_v43 }
 0x183   : > { %v1172_v46 = vsel %vm1171_vm5, %v1169_v40, %v1170_v43 }
 0x184   : > { %v1174_v48 = vsel %vm1173_vm7, %v1172_v46, 0 }
 0x185   : > { %v3455_v49 = vsel %vm1180_vm6, %v1174_v48, 4294967295 }
 0x186   : > { %vm1182_vm8 = vcmp.eq.s32.totalorder %v3423_v44, %v3455_v49  ;;  %vm1184_vm9 = vcmp.eq.s32.totalorder %v3429_v56, %v3455_v49  ;;  %vm1185_vm10 = vcmp.eq.s32.totalorder %v3432_v57, %v3455_v49  ;;  %vm1183_vm11 = vcmp.eq.s32.totalorder %v3426_v52, %v3455_v49 }
 0x187   : > { %vm3474_vm12 = vmpackc.low %vm1183_vm11, %vm1182_vm8  ;;  %vm1186_vm14 = vcmp.eq.s32.totalorder %v3435_v63, %v3455_v49  ;;  %vm1187_vm15 = vcmp.eq.s32.totalorder %v3438_v17, %v3455_v49  ;;  %v2168_v28 = vsel %vm1182_vm8, 1.0, %v3041_v8  ;;  %v2169_v36 = vsel %vm1183_vm11, 1.0, %v3041_v8 }
 0x188   : > { %2690 = vmatpush3.bf16.xpose.msk.msra.mxu1 %vm3474_vm12, %v3042_v61  ;;  %2701 = vmatprep.subr.msk.bf16.mxu0 %vm3474_vm12, %v3042_v61  ;;  %vm3496_vm13 = vmpackc.low %vm1185_vm10, %vm1184_vm9  ;;  %vm1188_vm1 = vcmp.eq.s32.totalorder %v3441_v3, %v3455_v49  ;;  %vm1189_vm3 = vcmp.eq.s32.totalorder %v3444_v5, %v3455_v49  ;;  %v3549_v44 = vsub.f32 %v2168_v28, %v2168_v28  ;;  %v1426_v52 = vand.u32 4294901760, %v3526_v39 }
 0x189   : > { %2703 = vmatpush3.bf16.msk.msra.mxu0 %vm3474_vm12, %v3042_v61  ;;  %2691 = vmatprep.subr.bf16.mxu1 %v3039_v1  ;;  %vm3537_vm0 = vmpackc.low %vm1187_vm15, %vm1186_vm14  ;;  %v3551_v50 = vsub.f32 %v2169_v36, %v2169_v36  ;;  %v2170_v9 = vsel %vm1184_vm9, 1.0, %v3041_v8  ;;  %v2171_v0 = vsel %vm1185_vm10, 1.0, %v3041_v8  ;;  %v1418_v56 = vand.u32 4294901760, %v1417_v18 }
 0x18a   : > { %2705 = vmatprep.subr.msk.bf16.mxu0 %vm3496_vm13, %v3042_v61  ;;  %vm3566_vm4 = vmpackc.low %vm1189_vm3, %vm1188_vm1  ;;  %v1437_v26 = vand.u32 4294901760, %v3549_v44  ;;  %v1427_v6 = vsub.f32 %v3526_v39, %v1426_v52  ;;  %v3596_v7 = vsub.f32 %v2170_v9, %v2170_v9  ;;  %v3604_v11 = vsub.f32 %v2171_v0, %v2171_v0 }
 0x18b   : > { %v1444_v29 = vand.u32 4294901760, %v3551_v50  ;;  %v2172_v12 = vsel %vm1186_vm14, 1.0, %v3041_v8  ;;  %v2173_v20 = vsel %vm1187_vm15, 1.0, %v3041_v8  ;;  %v2174_v63 = vsel %vm1188_vm1, 1.0, %v3041_v8 }
 0x18c   : > { %v1438_v10 = vsub.f32 %v3549_v44, %v1437_v26  ;;  %v1428_v21 = vand.u32 4294901760, %v1427_v6  ;;  %v2175_v22 = vsel %vm1189_vm3, 1.0, %v3041_v8  ;;  %v1451_v24 = vand.u32 4294901760, %v3596_v7 }
 0x18d   : > { %2707 = vmatpush3.bf16.msk.msra.mxu0 %vm3496_vm13, %v3042_v61  ;;  %v1445_v57 = vsub.f32 %v3551_v50, %v1444_v29  ;;  %v3627_v25 = vsub.f32 %v2172_v12, %v2172_v12  ;;  %v1458_v33 = vand.u32 4294901760, %v3604_v11  ;;  %v3632_v34 = vsub.f32 %v2174_v63, %v2174_v63 }
 0x18e   : > { %2709 = vmatprep.subr.msk.bf16.mxu0 %vm3537_vm0, %v3042_v61  ;;  %v1439_v17 = vand.u32 4294901760, %v1438_v10  ;;  %v3634_v3 = vsub.f32 %v2175_v22, %v2175_v22  ;;  %v1452_v5 = vsub.f32 %v3596_v7, %v1451_v24  ;;  %v2736_v10 = vpack.c.bf16 %v3604_v11, %v3596_v7 }
 0x18f   : > { %v1446_v27 = vand.u32 4294901760, %v1445_v57  ;;  %v1459_v35 = vsub.f32 %v3604_v11, %v1458_v33  ;;  %v1465_v40 = vand.u32 4294901760, %v3627_v25  ;;  %v1479_v45 = vand.u32 4294901760, %v3632_v34 }
 0x190   : > { %2693 = vmatpush3.bf16.xpose.msk.msra.mxu1 %vm3496_vm13, %v3042_v61  ;;  %v1486_v46 = vand.u32 4294901760, %v3634_v3  ;;  %v1453_v47 = vand.u32 4294901760, %v1452_v5  ;;  %v2744_v12 = vpack.c.bf16 %v3634_v3, %v3632_v34 }
 0x191   : > { %2711 = vmatpush3.bf16.msk.msra.mxu0 %vm3537_vm0, %v3042_v61  ;;  %2694 = vmatprep.subr.bf16.mxu1 %v3039_v1  ;;  %v2716_v8 = vpack.c.bf16 %v1446_v27, %v1439_v17  ;;  %v1460_v48 = vand.u32 4294901760, %v1459_v35  ;;  %v1466_v49 = vsub.f32 %v3627_v25, %v1465_v40  ;;  %v1480_v55 = vsub.f32 %v3632_v34, %v1479_v45 }
 0x192   : > { %2713 = vmatprep.subr.msk.bf16.mxu0 %vm3566_vm4, %v3042_v61  ;;  %v1487_v18 = vsub.f32 %v3634_v3, %v1486_v46 }
 0x193   : > { %v2720_v28 = vpack.c.bf16 %v1460_v48, %v1453_v47  ;;  %v1467_v36 = vand.u32 4294901760, %v1466_v49  ;;  %v1481_v0 = vand.u32 4294901760, %v1480_v55 }
 0x195   : > { %2715 = vmatpush3.bf16.msk.msra.mxu0 %vm3566_vm4, %v3042_v61 }
 0x198   : > { %2696 = vmatpush3.bf16.xpose.msk.msra.mxu1 %vm3537_vm0, %v3042_v61  ;;  %2525 = vmatmul.mubr.f32.vlgmr.msra.gmra.mrb[8].mxu0 %v1408_v2  ;;  %v1488_v2 = vand.u32 4294901760, %v1487_v18 }
 0x199   : > { %2697 = vmatprep.subr.bf16.mxu1 %v3039_v1  ;;  %2527 = vmatprep.mubr.f32.mxu0 %v1418_v56  ;;  %v3630_v1 = vsub.f32 %v2173_v20, %v2173_v20  ;;  %v2732_v56 = vpack.c.bf16 %v3551_v50, %v3549_v44  ;;  %v2764_v20 = vpack.c.bf16 %v1444_v29, %v1437_v26 }
 0x19a   : > { %v2728_v6 = vpack.c.bf16 %v1488_v2, %v1481_v0 }
 0x19b   : > { %v1472_v43 = vand.u32 4294901760, %v3630_v1  ;;  %v2740_v57 = vpack.c.bf16 %v3630_v1, %v3627_v25 }
 0x19c   : > { %2528 = vmatmul.mubr.f32.gmra.mrb[10].mxu0 %v1428_v21 }
 0x19d   : > { %v1473_v54 = vsub.f32 %v3630_v1, %v1472_v43 }
 0x19f   : > { %v1474_v51 = vand.u32 4294901760, %v1473_v54 }
 0x1a0   : > { %2699 = vmatpush3.bf16.xpose.msk.msra.mxu1 %vm3566_vm4, %v3042_v61 }
 0x1a1   : > { %2717 = vmatprep.subr.bf16.mxu1 %v2716_v8  ;;  %v2724_v9 = vpack.c.bf16 %v1474_v51, %v1467_v36 }
 0x1a7   : > { %2506 = vmatmul.mubr.f32.vlgmr.msra.gmra.mrb[0].mxu1 %v3043_v60 }
 0x1a8   : > { %2719 = vmatpush3.bf16.msra.mxu1 %v2716_v8  ;;  %2546 = vmatprep.mubr.f32.mxu1 %v3414_v14 }
 0x1a9   : > { %2721 = vmatprep.subr.bf16.mxu1 %v2720_v28 }
 0x1ac   : > { %2723 = vmatpush3.bf16.msra.mxu1 %v2720_v28 }
 0x1ad   : > { %2725 = vmatprep.subr.bf16.mxu1 %v2724_v9 }
 0x1b0   : > { %2727 = vmatpush3.bf16.msra.mxu1 %v2724_v9 }
 0x1b1   : > { %2729 = vmatprep.subr.bf16.mxu1 %v2728_v6 }
 0x1b4   : > { %2731 = vmatpush3.bf16.msra.mxu1 %v2728_v6 }
 0x1b5   : > { %2733 = vmatprep.subr.bf16.mxu1 %v2732_v56 }
 0x1b7   : > { %2547 = vmatmul.mubr.f32.vlgmr.msra.gmra.mrb[2].mxu1 %v3457_v53 }
 0x1b8   : > { %2735 = vmatpush3.bf16.msra.mxu1 %v2732_v56  ;;  %2549 = vmatprep.mubr.f32.mxu1 %v3478_v59 }
 0x1b9   : > { %2737 = vmatprep.subr.bf16.mxu1 %v2736_v10 }
 0x1bb   : > { %2550 = vmatmul.mubr.f32.gmra.mrb[4].mxu1 %v3514_v23 }
 0x1bc   : > { %2739 = vmatpush3.bf16.msra.mxu1 %v2736_v10  ;;  %2568 = vmatprep.mubr.f32.mxu1 %v3417_v15  ;;  %v2768_v15 = vpack.c.bf16 %v1458_v33, %v1451_v24 }
 0x1bd   : > { %2741 = vmatprep.subr.bf16.mxu1 %v2740_v57 }
 0x1c0   : > { %2743 = vmatpush3.bf16.msra.mxu1 %v2740_v57 }
 0x1c1   : > { %2745 = vmatprep.subr.bf16.mxu1 %v2744_v12 }
 0x1c4   : > { %2747 = vmatpush3.bf16.msra.mxu1 %v2744_v12 }
 0x1c5   : > { %2749 = vmatprep.subr.msk.bf16.mxu1 %vm3474_vm12, %v3042_v61 }
 0x1c7   : > { %2569 = vmatmul.mubr.f32.vlgmr.msra.gmra.mrb[2].mxu1 %v3488_v4  ;;  %v2776_v4 = vpack.c.bf16 %v1486_v46, %v1479_v45 }
 0x1c8   : > { %2571 = vmatprep.mubr.f32.mxu1 %v3505_v16  ;;  %2751 = vmatpush3.bf16.msk.msra.mxu1 %vm3474_vm12, %v3042_v61 }
 0x1c9   : > { %2753 = vmatprep.subr.msk.bf16.mxu1 %vm3496_vm13, %v3042_v61 }
 0x1cb   : > { %2572 = vmatmul.mubr.f32.gmra.mrb[4].mxu1 %v3526_v39 }
 0x1cc   : > { %2755 = vmatpush3.bf16.msk.msra.mxu1 %vm3496_vm13, %v3042_v61  ;;  %2590 = vmatprep.mubr.f32.mxu1 %v1396_v19  ;;  %v2772_v19 = vpack.c.bf16 %v1472_v43, %v1465_v40 }
 0x1cd   : > { %2757 = vmatprep.subr.msk.bf16.mxu1 %vm3537_vm0, %v3042_v61 }
 0x1d0   : > { %2759 = vmatpush3.bf16.msk.msra.mxu1 %vm3537_vm0, %v3042_v61 }
 0x1d1   : > { %2761 = vmatprep.subr.msk.bf16.mxu1 %vm3566_vm4, %v3042_v61 }
 0x1d4   : > { %2763 = vmatpush3.bf16.msk.msra.mxu1 %vm3566_vm4, %v3042_v61 }
 0x1d5   : > { %2765 = vmatprep.subr.bf16.mxu1 %v2764_v20 }
 0x1d7   : > { %2591 = vmatmul.mubr.f32.vlgmr.msra.gmra.mrb[2].mxu1 %v1406_v37 }
 0x1d8   : > { %2593 = vmatprep.mubr.f32.mxu1 %v1416_v42  ;;  %2767 = vmatpush3.bf16.msra.mxu1 %v2764_v20 }
 0x1d9   : > { %2769 = vmatprep.subr.bf16.mxu1 %v2768_v15 }
 0x1db   : > { %2594 = vmatmul.mubr.f32.gmra.mrb[4].mxu1 %v1426_v52 }
 0x1dc   : > { %2771 = vmatpush3.bf16.msra.mxu1 %v2768_v15  ;;  %2612 = vmatprep.mubr.f32.mxu1 %v3414_v14 }
 0x1dd   : > { %2773 = vmatprep.subr.bf16.mxu1 %v2772_v19 }
 0x1e0   : > { %2775 = vmatpush3.bf16.msra.mxu1 %v2772_v19 }
 0x1e1   : > { %2777 = vmatprep.subr.bf16.mxu1 %v2776_v4 }
 0x1e4   : > { %2779 = vmatpush3.bf16.msra.mxu1 %v2776_v4 }
 0x1e5   : > { %2781 = vmatprep.subr.msk.bf16.mxu1 %vm3474_vm12, %v3042_v61 }
 0x1e7   : > { %2613 = vmatmul.mubr.f32.vlgmr.msra.gmra.mrb[2].mxu1 %v3457_v53 }
 0x1e8   : > { %2615 = vmatprep.mubr.f32.mxu1 %v3478_v59  ;;  %2783 = vmatpush3.bf16.msk.msra.mxu1 %vm3474_vm12, %v3042_v61 }
 0x1e9   : > { %2785 = vmatprep.subr.msk.bf16.mxu1 %vm3496_vm13, %v3042_v61 }
 0x1eb   : > { %2616 = vmatmul.mubr.f32.gmra.mrb[4].mxu1 %v3514_v23 }
 0x1ec   : > { %2787 = vmatpush3.bf16.msk.msra.mxu1 %vm3496_vm13, %v3042_v61  ;;  %2634 = vmatprep.mubr.f32.mxu1 %v3414_v14 }
 0x1ed   : > { %2789 = vmatprep.subr.msk.bf16.mxu1 %vm3537_vm0, %v3042_v61 }
 0x1f0   : > { %2791 = vmatpush3.bf16.msk.msra.mxu1 %vm3537_vm0, %v3042_v61 }
 0x1f1   : > { %2793 = vmatprep.subr.msk.bf16.mxu1 %vm3566_vm4, %v3042_v61 }
 0x1f4   : > { %2795 = vmatpush3.bf16.msk.msra.mxu1 %vm3566_vm4, %v3042_v61 }
 0x1f7   : > { %2635 = vmatmul.mubr.f32.vlgmr.msra.gmra.mrb[2].mxu1 %v3457_v53 }
 0x1f8   : > { %2637 = vmatprep.mubr.f32.mxu1 %v3478_v59 }
 0x1fb   : > { %2638 = vmatmul.mubr.f32.gmra.mrb[4].mxu1 %v3514_v23 }
 0x26b   : > { %v2526_v14 = vpop.f32.mrb[8].mxu0 }
 0x26c   : > { %v1400_v58 = vpop.f32.mrb[9].mxu0 }
 0x26f   : > { %v2529_v13 = vpop.f32.mrb[10].mxu0 }
 0x270   : > { %v1420_v16 = vpop.f32.mrb[11].mxu0 }
 0x27a   : > { %v3757_v37 = vpop.f32.mrb[0].mxu1 }
 0x27b   : > { %v2507_v39 = vpop.f32.mrb[1].mxu1 }
 0x2ca   : > { %v2636_v41 = vpop.f32.mrb[2].mxu1 }
 0x2cb   : > { %v2796_v42 = vadd.f32 %v2636_v41, %v2526_v14  ;;  %v1965_v61 = vpop.f32.mrb[3].mxu1 }
 0x2cc   : > { %v2797_v44 = vadd.f32 %v1965_v61, %v1400_v58 }
 0x2cd   : > { %1988 = vst [vmem:[%s218_s10 + $0x8] sm:$0xff] %v2796_v42  ;;  %v1992_v53 = vsub.f32 %v2796_v42, %v3227_v31 }
 0x2ce   : > { %1987 = vst [vmem:[%s218_s10] sm:$0xff] %v2797_v44  ;;  %v2639_v59 = vpop.f32.mrb[4].mxu1  ;;  %v1991_v62 = vsub.f32 %v2797_v44, %v3225_v30 }
 0x2cf   : > { %v2798_v23 = vadd.f32 %v2639_v59, %v2529_v13  ;;  %v1977_v50 = vpop.f32.mrb[5].mxu1  ;;  %v1996_v52 = vmul.f32 %v1992_v53, %v1992_v53 }
 0x2d0   : > { %v2799_v26 = vadd.f32 %v1977_v50, %v1420_v16  ;;  %v1995_v29 = vmul.f32 %v1991_v62, %v1991_v62 }
 0x2d1   : > { %1990 = vst [vmem:[%s218_s10 + $0x18] sm:$0xff] %v2798_v23  ;;  %2001 = vadd.xlane.f32.xlu1 %v1996_v52  ;;  %v1994_v31 = vsub.f32 %v2798_v23, %v3236_v38 }
 0x2d2   : > { %1989 = vst [vmem:[%s218_s10 + $0x10] sm:$0xff] %v2799_v26  ;;  %v1993_v7 = vsub.f32 %v2799_v26, %v3229_v32 }
 0x2d3   : > { %v1998_v21 = vmul.f32 %v1994_v31, %v1994_v31 }
 0x2d4   : > { %v1997_v11 = vmul.f32 %v1993_v7, %v1993_v7 }
 0x2d5   : > { %1999 = vadd.xlane.f32.xlu1 %v1995_v29 }
 0x2d9   : > { %2003 = vadd.xlane.f32.xlu1 %v1997_v11 }
 0x2dd   : > { %2005 = vadd.xlane.f32.xlu1 %v1998_v21 }
 0x2de   : > { %2939 = shalt.err (!%p2936_p5)
}
 0x2df   : > { %s2940_s5 = scalar_lea.hbm %s3773_s21, 512  ;;  %s2944_s9 = scalar_lea.hbm %s3857_s3, 1024 }
 0x2e0   : > { %p2941_p6 = scmp.ne.s32.totalorder %s3773_s21, %s2940_s5  ;;  %p2945_p10 = scmp.lt.u32.totalorder %s3773_s21, %s3857_s3 }
 0x2e1   : > { %p2946_p11 = scmp.lt.u32.totalorder %s2944_s9, %s2940_s5  ;;  %p2948_p13 = scmp.lt.u32.totalorder %s2940_s5, %s3773_s21 }
 0x2e2   : > { %p2942_p7 = pnand %p2941_p6, %p3113_p4 }
 0x2e3   : > { %p2947_p12 = por %p2946_p11, %p2945_p10 }
 0x2e4   : > { %p2943_p9 = pneg %p2942_p7 }
 0x2e5   : > { %p2949_p0 = por %p2948_p13, %p2947_p12 }
 0x2e7   : > { %p2950_p1 = pnand %p2949_p0, %p2943_p9 }
 0x2e9   : > { %2953 = shalt.err (!%p2950_p1)
}
 0x2ea   : > { %s3045_s13 = smov 128   ;;  %s3046_s14 = smov 8   ;;  %vm2017_vm5 = vcmask 531456  }
 0x2eb   : > { %2856 = dma.vmem_to_hbm [thread:$0]  (%p3113_p4), %s3767_s11, 512, %s3773_s21, %s2021_s22, %s3045_s13, %s3045_s13, %s3046_s14  }
 0x2ec   : > { %s2211_s24 = sshll.u32 %s3028_s18, 4  ;;  %s224_s26 = scalar_lea.vmem [#allocation4], %s3760_s8 }
 0x2ed   : > { %s2056_s29 = sshll.u32 %s224_s26, 4  ;;  %s3806_s22 = scalar_lea.hbm %s3858_s4, %s2211_s24  ;;  %s3808_s29 = int_to_ptr.vmem [resolvable:$true] %s2056_s29 }
 0x2ee   : > { %s2026_s18 = scalar_lea.sflag [#allocation5], %s3760_s8  ;;  %s2954_s30 = scalar_lea.vmem %s3808_s29, 16 }
 0x2ef   : > { %p2955_p2 = scmp.ne.s32.totalorder %s3808_s29, %s2954_s30  ;;  %s3047_s5 = smov [#allocation4]  }
 0x2f0   : > { %s2958_s6 = sshll.u32 %s3047_s5, 4  ;;  %s2959_s6 = int_to_ptr.vmem [resolvable:$false] %s2958_s6 }
 0x2f1   : > { %p2956_p3 = pnand %p2955_p2, %p3113_p4  ;;  %s2960_s7 = scalar_lea.vmem %s2959_s6, 32 }
 0x2f2   : > { %p2961_p6 = scmp.lt.s32.totalorder %s3808_s29, %s2959_s6  ;;  %p2962_p7 = scmp.lt.s32.totalorder %s2960_s7, %s2954_s30 }
 0x2f3   : > { %p2957_p5 = pneg %p2956_p3 }
 0x2f4   : > { %p2963_p9 = por %p2962_p7, %p2961_p6 }
 0x2f6   : > { %p2964_p10 = pnand %p2963_p9, %p2957_p5 }
 0x35e   : > { %v2002_v30 = vpop.xlane.xlu1 %2001 }
 0x362   : > { %v2000_v32 = vpop.xlane.xlu1 %1999 }
 0x363   : > { %v2007_v63 = vadd.f32 %v2002_v30, %v2000_v32 }
 0x366   : > { %v2004_v38 = vpop.xlane.xlu1 %2003 }
 0x367   : > { %v2008_v22 = vadd.f32 %v2007_v63, %v2004_v38 }
 0x36a   : > { %v2006_v24 = vpop.xlane.xlu1 %2005 }
 0x36b   : > { %v2009_v25 = vadd.f32 %v2008_v22, %v2006_v24 }
 0x36d   : > { %v2010_v17 = vrot.slane %v2009_v25, 4 }
 0x36f   : > { %v2011_v27 = vadd.f32 %v2010_v17, %v2009_v25 }
 0x371   : > { %v2012_v33 = vrot.slane %v2011_v27, 2 }
 0x373   : > { %v2013_v1 = vadd.f32 %v2012_v33, %v2011_v27 }
 0x375   : > { %v2014_v34 = vrot.slane %v2013_v1, 1 }
 0x377   : > { %v2015_v3 = vadd.f32 %v2014_v34, %v2013_v1 }
 0x379   : > { %v2016_v5 = vsel %vm1308_vm2, %v3757_v37, %v2015_v3 }
 0x37a   : > { %v2018_v8 = vsel %vm2017_vm5, %v2016_v5, 0.0 }
 0x37b   : > { %2019 = vst [vmem:[%s224_s26] sm:$0x1] %v2018_v8 }
 0x37c   : > { %2967 = shalt.err (!%p2964_p10)
}
 0x37d   : > { %s2968_s8 = scalar_lea.hbm %s3806_s22, 16  ;;  %s2972_s12 = scalar_lea.hbm %s3858_s4, 32 }
 0x37e   : > { %p2969_p11 = scmp.ne.s32.totalorder %s3806_s22, %s2968_s8  ;;  %p2973_p0 = scmp.lt.u32.totalorder %s3806_s22, %s3858_s4 }
 0x37f   : > { %p2974_p1 = scmp.lt.u32.totalorder %s2972_s12, %s2968_s8  ;;  %p2976_p3 = scmp.lt.u32.totalorder %s2968_s8, %s3806_s22 }
 0x380   : > { %p2970_p12 = pnand %p2969_p11, %p3113_p4 }
 0x381   : > { %p2975_p2 = por %p2974_p1, %p2973_p0 }
 0x382   : > { %p2971_p13 = pneg %p2970_p12 }
 0x383   : > { %p2977_p5 = por %p2976_p3, %p2975_p2 }
 0x385   : > { %p2978_p6 = pnand %p2977_p5, %p2971_p13 }
 0x387   : > { %2981 = shalt.err (!%p2978_p6)
}
 0x388   : > { %2857 = dma.vmem_to_hbm [thread:$0]  (%p3113_p4), %s3808_s29, 16, %s3806_s22, %s2026_s18  }
 0x389 PF: > { %p2867_p7 = scmp.ge.s32.totalorder %s3036_s20, 2  ;;  %s2068_s24 = sand.u32 1, %s3016_s15  }
 0x38a   : > { %s2069_s26 = scalar_lea.sflag [#allocation3], %s2068_s24 }
 0x38b   : > { %p2861_p9 = pnand %p2867_p7, %p3120_p8 }
 0x38d   : > { %3007 = dma.done.wait (!%p2861_p9), %s2069_s26, 512  }
 0x38e   : > { %3009 = vsyncadd (!%p2861_p9), %s2069_s26, 4294966784  ;;  %s2078_s11 = scalar_lea.sflag [#allocation5], %s2068_s24 }
 0x38f   : > { %3011 = dma.done.wait (!%p2861_p9), %s2078_s11, 16  }
 0x390   : > { %3013 = vsyncadd (!%p2861_p9), %s2078_s11, 4294967280  ;;  %s21_s20 = sadd.s32 1, %s3036_s20   ;;  %s3869_s15 = smov %s3020_s16 }
 0x391   : > { %p18_p10 = scmp.ge.s32.totalorder %s21_s20, 4   ;;  %s3870_s16 = smov %s3024_s17 }
 0x392   : > { %s3871_s17 = smov %s3126_s28  ;;  %s3872_s18 = smov %s3032_s19 }
 0x393   : > { %s3873_s19 = smov %s3875_s23  ;;  %20 = sbr.rel (!%p18_p10) target bundleno = 6 (0x6), region = 84 }
 0x39a   :  { %2082 = vsyncpa [#allocation3], 1 }
 0x39b   :  { %2084 = vsyncpa [#allocation3 + $0x1], 1 }
 0x39c   :  { %2085 = vsyncpa [#allocation5], 1 }
 0x39d   :  { %2087 = vsyncpa [#allocation5 + $0x1], 1 }

// kernel: tpu_custom_call.1
= control target key start
LH: loop header
LB: loop body
LE: loop exit
PB: predicated region body
PF: predicated region fallthrough
CT: control target
= control target key end

     0   :  { %10 = vsyncpa [#allocation3], 0  ;;  %s3854_s0 = inlined_call_operand.vmem [shape: f32[2,32,128], index: 0, kind: input, shape index: {}]   ;;  %s3855_s1 = inlined_call_operand.vmem [shape: f32[64,32], index: 1, kind: input, shape index: {}]   ;;  %s3856_s2 = inlined_call_operand.vmem [shape: f32[64,1], index: 2, kind: input, shape index: {}]   ;;  %s3857_s3 = inlined_call_operand.hbm [shape: f32[2,32,128], index: 3, kind: output, shape index: {0}]   ;;  %s3858_s4 = inlined_call_operand.hbm [shape: f32[2,1,1,128], index: 4, kind: output, shape index: {1}]  }
   0x1   :  { %12 = vsyncpa [#allocation3 + $0x1], 0 }
   0x2   :  { %13 = vsyncpa [#allocation5], 0 }
   0x3   :  { %15 = vsyncpa [#allocation5 + $0x1], 0  ;;  %s3073_s15 = smov 0   ;;  %s3075_s16 = smov 0  }
   0x4   :  { %s3077_s17 = smov 0   ;;  %s3079_s18 = smov 0  }
   0x5   :  { %s3081_s19 = smov 0   ;;  %s3083_s20 = smov 0  }
   0x6 LB: > { %s2160_s21 = sadd.s32 4294967295, %s3036_s20   ;;  %s2161_s22 = sadd.s32 4294967294, %s3036_s20   ;;  %s3036_s20 = sphi %s3083_s20, %s21_s20   ;;  %s3032_s19 = sphi %s3081_s19, %s3873_s19   ;;  %s3028_s18 = sphi %s3079_s18, %s3872_s18   ;;  %s3024_s17 = sphi %s3077_s17, %s3871_s17   ;;  %s3020_s16 = sphi %s3075_s16, %s3870_s16   ;;  %s3016_s15 = sphi %s3073_s15, %s3869_s15  }
   0x7   : > { %s33_s23 = sadd.s32 1, %s3032_s19  ;;  %s112_s24 = sadd.s32 1, %s3024_s17 }
   0x8   : > { %p35_p0 = scmp.ge.s32.totalorder %s33_s23, 2  ;;  %p122_p1 = scmp.ne.s32.totalorder %s3024_s17, %s3020_s16 }
   0x9   : > { %p123_p2 = scmp.eq.s32.totalorder %s2160_s21, 1  ;;  %p128_p3 = scmp.ne.s32.totalorder %s3020_s16, %s3016_s15 }
   0xa   : > { %s3875_s23 = smov (%p35_p0, %s33_s23), 0  ;;  %p129_p5 = scmp.eq.s32.totalorder %s2161_s22, 1 }
   0xb   : > { %p3113_p4 = por %p123_p2, %p122_p1  ;;  %s107_s26 = ssub.s32 %s3032_s19, %s3875_s23 }
   0xc   : > { %p2164_p6 = scmp.ge.s32.totalorder %s3036_s20, 1  ;;  %p110_p7 = scmp.eq.s32.totalorder %s107_s26, 0 }
   0xd   : > { %p3120_p8 = por %p129_p5, %p128_p3  ;;  %p192_p9 = scmp.lt.s32.totalorder %s3036_s20, 3 }
   0xe   : > { %s3126_s28 = scalar_select %p110_p7, %s3024_s17, %s112_s24  }
   0xf   : > { %p193_p10 = pnand %p2164_p6, %p192_p9 }
  0x10   : > { %p225_p11 = scmp.lt.s32.totalorder (!%p193_p10), %s3028_s18, 1  ;;  %v3132_v0 = vld [vmem:[%s3855_s1] sm:$0xff] (!%p193_p10)  ;;  %vm245_vm0 = vcmask (!%p193_p10), 261120   ;;  %v3137_v1 = vld [vmem:[%s3855_s1 + $0x8] sm:$0xff] (!%p193_p10)  ;;  %v3142_v2 = vld [vmem:[%s3855_s1 + $0x10] sm:$0xff] (!%p193_p10)  ;;  %v3038_v9 = vmov (!%p193_p10), 0  }
  0x11   : > { %196 = sbr.rel (%p193_p10) target bundleno = 905 (0x389), region = 32  ;;  %v247_v3 = vsel (!%p193_p10), %vm245_vm0, %v3132_v0, 0  ;;  %v250_v4 = vsel (!%p193_p10), %vm245_vm0, %v3137_v1, 0  ;;  %v253_v5 = vsel (!%p193_p10), %vm245_vm0, %v3142_v2, 0  ;;  %v3153_v6 = vld [vmem:[%s3855_s1 + $0x18] sm:$0xff] (!%p193_p10)  ;;  %v3158_v7 = vld [vmem:[%s3855_s1 + $0x20] sm:$0xff] (!%p193_p10)  ;;  %2925 = vset.pattern.permute.xlu1 (!%p193_p10), %v3038_v9  ;;  %2924 = vset.pattern.permute.xlu0 (!%p193_p10), %v3038_v9 }
  0x12   : > { %v3163_v8 = vld [vmem:[%s3855_s1 + $0x28] sm:$0xff] (!%p193_p10)  ;;  %v3168_v10 = vand.u32 (!%p193_p10), 4294901760, %v247_v3  ;;  %v3170_v11 = vand.u32 (!%p193_p10), 4294901760, %v250_v4  ;;  %v3172_v12 = vand.u32 (!%p193_p10), 4294901760, %v253_v5  ;;  %v256_v13 = vsel (!%p193_p10), %vm245_vm0, %v3153_v6, 0  ;;  %v3179_v14 = vld [vmem:[%s3855_s1 + $0x30] sm:$0xff] (!%p193_p10) }
  0x13   : > { %v3181_v15 = vand.u32 (!%p193_p10), 4294901760, %v256_v13  ;;  %v259_v16 = vsel (!%p193_p10), %vm245_vm0, %v3158_v7, 0  ;;  %v262_v17 = vsel (!%p193_p10), %vm245_vm0, %v3163_v8, 0  ;;  %v1058_v18 = vld [vmem:[%s3856_s2 + $0x10] sm:$0xff] (!%p193_p10)  ;;  %v1056_v23 = vld [vmem:[%s3856_s2] sm:$0xff] (!%p193_p10)  ;;  %v265_v26 = vsel (!%p193_p10), %vm245_vm0, %v3179_v14, 0 }
  0x14   : > { %v3191_v19 = vsub.f32 (!%p193_p10), %v247_v3, %v3168_v10  ;;  %v3194_v20 = vsub.f32 (!%p193_p10), %v250_v4, %v3170_v11  ;;  %v3197_v21 = vsub.f32 (!%p193_p10), %v253_v5, %v3172_v12  ;;  %v3199_v22 = vand.u32 (!%p193_p10), 4294901760, %v259_v16  ;;  %1076 = vperm.xlu1 (!%p193_p10), %2925, %v1058_v18   ;;  %v3217_v27 = vld [vmem:[%s3855_s1 + $0x38] sm:$0xff] (!%p193_p10)  ;;  %1066 = vperm.xlu0 (!%p193_p10), %2924, %v1056_v23   ;;  %v1057_v29 = vld [vmem:[%s3856_s2 + $0x8] sm:$0xff] (!%p193_p10)  ;;  %v1060_v57 = vld [vmem:[%s3856_s2 + $0x20] sm:$0xff] (!%p193_p10)  ;;  %s3760_s8 = sand.u32 (!%p193_p10), 1, %s3020_s16   ;;  %s2215_s12 = sshll.u32 (!%p193_p10), %s3028_s18, 9 }
  0x15   : > { %v3208_v24 = vsub.f32 (!%p193_p10), %v256_v13, %v3181_v15  ;;  %v3210_v25 = vand.u32 (!%p193_p10), 4294901760, %v262_v17  ;;  %v1059_v28 = vld [vmem:[%s3856_s2 + $0x18] sm:$0xff] (!%p193_p10)  ;;  %v3246_v43 = vand.u32 (!%p193_p10), 4294901760, %v265_v26  ;;  %v268_v44 = vsel (!%p193_p10), %vm245_vm0, %v3217_v27, 0  ;;  %v1061_v56 = vld [vmem:[%s3856_s2 + $0x28] sm:$0xff] (!%p193_p10)  ;;  %s2021_s22 = scalar_lea.sflag (!%p193_p10), [#allocation3], %s3760_s8 }
  0x16   : > { %v341_v33 = vand.u32 (!%p193_p10), 4294901760, %v3191_v19  ;;  %v351_v34 = vand.u32 (!%p193_p10), 4294901760, %v3194_v20  ;;  %v361_v35 = vand.u32 (!%p193_p10), 4294901760, %v3197_v21  ;;  %v3240_v40 = vsub.f32 (!%p193_p10), %v259_v16, %v3199_v22  ;;  %s3044_s26 = smov (!%p193_p10), [#allocation2]  }
  0x17   : > { %v371_v48 = vand.u32 (!%p193_p10), 4294901760, %v3208_v24  ;;  %v3279_v58 = vsub.f32 (!%p193_p10), %v262_v17, %v3210_v25  ;;  %v3287_v61 = vand.u32 (!%p193_p10), 4294901760, %v268_v44  ;;  %v3300_v4 = vsub.f32 (!%p193_p10), %v265_v26, %v3246_v43  ;;  %v1063_v26 = vld [vmem:[%s3856_s2 + $0x38] sm:$0xff] (!%p193_p10)  ;;  %s2930_s29 = sshll.u32 (!%p193_p10), %s3044_s26, 4  ;;  %s2931_s29 = int_to_ptr.vmem [resolvable:$false] %s2930_s29 }
  0x18   : > { %s226_s21 = scalar_select %p225_p11, %s3028_s18, 1  ;;  %v342_v42 = vsub.f32 %v3191_v19, %v341_v33  ;;  %1081 = vperm.xlu1 %2925, %v1059_v28   ;;  %1071 = vperm.xlu0 %2924, %v1057_v29   ;;  %v352_v51 = vsub.f32 %v3194_v20, %v351_v34  ;;  %v362_v52 = vsub.f32 %v3197_v21, %v361_v35  ;;  %v381_v55 = vand.u32 4294901760, %v3240_v40  ;;  %v1062_v29 = vld [vmem:[%s3856_s2 + $0x30] sm:$0xff] }
  0x19   : > { %v372_v3 = vsub.f32 %v3208_v24, %v371_v48  ;;  %v391_v23 = vand.u32 4294901760, %v3279_v58  ;;  %v3306_v28 = vsub.f32 %v268_v44, %v3287_v61  ;;  %vm3040_vm1 = vmmov 0  }
  0x1a   : > { %s2214_s30 = sshll.u32 %s226_s21, 5  ;;  %v343_v50 = vand.u32 4294901760, %v342_v42  ;;  %v353_v5 = vand.u32 4294901760, %v352_v51  ;;  %v363_v9 = vand.u32 4294901760, %v362_v52  ;;  %vm1308_vm2 = vcmask 523264   ;;  %s3773_s21 = scalar_lea.hbm %s3857_s3, %s2215_s12 }
  0x1b   : > { %s232_s9 = scalar_lea.vmem %s3854_s0, %s2214_s30  ;;  %v373_v51 = vand.u32 4294901760, %v372_v3  ;;  %v392_v52 = vsub.f32 %v3279_v58, %v391_v23  ;;  %s2932_s30 = scalar_lea.vmem %s2931_s29, 1024 }
  0x1c   : > { %v3225_v30 = vld [vmem:[%s232_s9] sm:$0xff]  ;;  %v3227_v31 = vld [vmem:[%s232_s9 + $0x8] sm:$0xff]  ;;  %v3229_v32 = vld [vmem:[%s232_s9 + $0x10] sm:$0xff]  ;;  %2377 = vmatprep.mubr.f32.mxu0 %v343_v50  ;;  %1091 = vperm.xlu1 %2925, %v1061_v56   ;;  %v411_v56 = vand.u32 4294901760, %v3306_v28 }
  0x1d   : > { %v271_v36 = vand.u32 4294901760, %v3225_v30  ;;  %v274_v37 = vand.u32 4294901760, %v3227_v31  ;;  %v3236_v38 = vld [vmem:[%s232_s9 + $0x18] sm:$0xff]  ;;  %v277_v39 = vand.u32 4294901760, %v3229_v32  ;;  %1086 = vperm.xlu0 %2924, %v1060_v57   ;;  %v393_v3 = vand.u32 4294901760, %v392_v52  ;;  %s2165_s9 = sshll.u32 %s3760_s8, 5 }
  0x1e   : > { %v280_v41 = vand.u32 4294901760, %v3236_v38  ;;  %s218_s10 = scalar_lea.vmem [#allocation2], %s2165_s9 }
  0x1f   : > { %v3250_v45 = vpack.c.bf16 %v274_v37, %v271_v36  ;;  %v3253_v46 = vsub.f32 %v3225_v30, %v271_v36  ;;  %v3256_v47 = vsub.f32 %v3227_v31, %v274_v37  ;;  %v3282_v59 = vsub.f32 %v3229_v32, %v277_v39  ;;  %s2039_s11 = sshll.u32 %s218_s10, 4  ;;  %s3767_s11 = int_to_ptr.vmem [resolvable:$true] %s2039_s11 }
  0x20   : > { %v3259_v49 = vpack.c.bf16 %v280_v41, %v277_v39  ;;  %v3285_v60 = vsub.f32 %v3236_v38, %v280_v41  ;;  %v382_v36 = vsub.f32 %v3240_v40, %v381_v55  ;;  %v401_v41 = vand.u32 4294901760, %v3300_v4  ;;  %1101 = vperm.xlu1 %2925, %v1063_v26   ;;  %s2926_s24 = scalar_lea.vmem %s3767_s11, 512  ;;  %p2933_p1 = scmp.lt.s32.totalorder %s3767_s11, %s2931_s29 }
  0x21   : > { %2641 = vmatprep.subr.bf16.mxu0 %v3250_v45  ;;  %v422_v53 = vand.u32 4294901760, %v3253_v46  ;;  %v429_v54 = vand.u32 4294901760, %v3256_v47  ;;  %v436_v13 = vand.u32 4294901760, %v3282_v59  ;;  %1096 = vperm.xlu0 %2924, %v1062_v29   ;;  %p2927_p12 = scmp.ne.s32.totalorder %s3767_s11, %s2926_s24  ;;  %p2934_p2 = scmp.lt.s32.totalorder %s2932_s30, %s2926_s24 }
  0x22   : > { %2643 = vmatpush3.bf16.msra.mxu0 %v3250_v45  ;;  %v443_v16 = vand.u32 4294901760, %v3285_v60  ;;  %v383_v57 = vand.u32 4294901760, %v382_v36  ;;  %v2660_v26 = vpack.c.bf16 %v3285_v60, %v3282_v59 }
  0x23   : > { %2645 = vmatprep.subr.bf16.mxu0 %v3259_v49  ;;  %v423_v62 = vsub.f32 %v3253_v46, %v422_v53  ;;  %v430_v63 = vsub.f32 %v3256_v47, %v429_v54  ;;  %v437_v37 = vsub.f32 %v3282_v59, %v436_v13  ;;  %v2672_v29 = vpack.c.bf16 %v429_v54, %v422_v53  ;;  %p2928_p13 = pnand %p2927_p12, %p3113_p4  ;;  %p2935_p3 = por %p2934_p2, %p2933_p1 }
  0x24   : > { %v444_v39 = vsub.f32 %v3285_v60, %v443_v16 }
  0x25   : > { %v424_v17 = vand.u32 4294901760, %v423_v62  ;;  %v431_v18 = vand.u32 4294901760, %v430_v63  ;;  %v438_v44 = vand.u32 4294901760, %v437_v37  ;;  %v402_v63 = vsub.f32 %v3300_v4, %v401_v41  ;;  %p2929_p0 = pneg %p2928_p13 }
  0x26   : > { %2647 = vmatpush3.bf16.msra.mxu0 %v3259_v49  ;;  %v445_v50 = vand.u32 4294901760, %v444_v39  ;;  %v1112_v39 = vlaneseq }
  0x27   : > { %v2648_v42 = vpack.c.bf16 %v431_v18, %v424_v17  ;;  %v2656_v17 = vpack.c.bf16 %v3256_v47, %v3253_v46  ;;  %v403_v18 = vand.u32 4294901760, %v402_v63  ;;  %p2936_p5 = pnand %p2935_p3, %p2929_p0 }
  0x28   : > { %v2652_v62 = vpack.c.bf16 %v445_v50, %v438_v44  ;;  %v3423_v44 = vshrl.u32 %v1112_v39, 7 }
  0x29   : > { %2378 = vmatmul.mubr.f32.vlgmr.msra.gmra.mrb[0].mxu0 %v353_v5  ;;  %2649 = vmatprep.subr.bf16.mxu0 %v2648_v42  ;;  %v412_v5 = vsub.f32 %v3306_v28, %v411_v56 }
  0x2a   : > { %2651 = vmatpush3.bf16.msra.mxu0 %v2648_v42  ;;  %2380 = vmatprep.mubr.f32.mxu0 %v363_v9  ;;  %v3426_v52 = vadd.s32 8, %v3423_v44  ;;  %v3435_v63 = vadd.s32 32, %v3423_v44 }
  0x2b   : > { %2653 = vmatprep.subr.bf16.mxu0 %v2652_v62  ;;  %v413_v9 = vand.u32 4294901760, %v412_v5  ;;  %v3444_v5 = vadd.s32 56, %v3423_v44 }
  0x2d   : > { %2381 = vmatmul.mubr.f32.gmra.mrb[2].mxu0 %v373_v51 }
  0x2e   : > { %2383 = vmatprep.mubr.f32.mxu0 %v383_v57  ;;  %2655 = vmatpush3.bf16.msra.mxu0 %v2652_v62  ;;  %v3432_v57 = vadd.s32 24, %v3423_v44 }
  0x2f   : > { %2657 = vmatprep.subr.bf16.mxu0 %v2656_v17 }
  0x31   : > { %2384 = vmatmul.mubr.f32.gmra.mrb[4].mxu0 %v393_v3  ;;  %v3441_v3 = vadd.s32 48, %v3423_v44 }
  0x32   : > { %2386 = vmatprep.mubr.f32.mxu0 %v403_v18 }
  0x35   : > { %2387 = vmatmul.mubr.f32.gmra.mrb[6].mxu0 %v413_v9 }
  0x36   : > { %2397 = vmatprep.mubr.f32.mxu0 %v3168_v10 }
  0x39   : > { %2398 = vmatmul.mubr.f32.vlgmr.msra.gmra.mrb[0].mxu0 %v3170_v11 }
  0x3a   : > { %2659 = vmatpush3.bf16.msra.mxu0 %v2656_v17  ;;  %2400 = vmatprep.mubr.f32.mxu0 %v3172_v12  ;;  %v3438_v17 = vadd.s32 40, %v3423_v44 }
  0x3b   : > { %2661 = vmatprep.subr.bf16.mxu0 %v2660_v26 }
  0x3d   : > { %2401 = vmatmul.mubr.f32.gmra.mrb[2].mxu0 %v3181_v15 }
  0x3e   : > { %2403 = vmatprep.mubr.f32.mxu0 %v3199_v22  ;;  %2663 = vmatpush3.bf16.msra.mxu0 %v2660_v26 }
  0x3f   : > { %2665 = vmatprep.subr.bf16.mxu0 %v3250_v45  ;;  %1276 = vxpose.xlu0.b32.start [1/8] (short) (narrow) %v3132_v0, 32  ;;  %v2676_v0 = vpack.c.bf16 %v443_v16, %v436_v13 }
  0x41   : > { %2404 = vmatmul.mubr.f32.gmra.mrb[4].mxu0 %v3210_v25 }
  0x42   : > { %2406 = vmatprep.mubr.f32.mxu0 %v3246_v43 }
  0x43   : > { %1277 = vxpose.xlu0.b32.cont [2/8] (short) (narrow) %v3137_v1, 32  ;;  %v3039_v1 = vmov 0.0|0.0  }
  0x44   : > { %2688 = vmatprep.subr.bf16.mxu1 %v3039_v1 }
  0x45   : > { %2407 = vmatmul.mubr.f32.gmra.mrb[6].mxu0 %v3287_v61 }
  0x46   : > { %2417 = vmatprep.mubr.f32.mxu0 %v3191_v19 }
  0x47   : > { %1278 = vxpose.xlu0.b32.cont [3/8] (short) (narrow) %v3142_v2, 32 }
  0x49   : > { %2418 = vmatmul.mubr.f32.vlgmr.msra.gmra.mrb[0].mxu0 %v3194_v20 }
  0x4a   : > { %2667 = vmatpush3.bf16.msra.mxu0 %v3250_v45  ;;  %2420 = vmatprep.mubr.f32.mxu0 %v3197_v21 }
  0x4b   : > { %2669 = vmatprep.subr.bf16.mxu0 %v3259_v49  ;;  %1279 = vxpose.xlu0.b32.cont [4/8] (short) (narrow) %v3153_v6, 32 }
  0x4d   : > { %2421 = vmatmul.mubr.f32.gmra.mrb[2].mxu0 %v3208_v24 }
  0x4e   : > { %2423 = vmatprep.mubr.f32.mxu0 %v3240_v40  ;;  %2671 = vmatpush3.bf16.msra.mxu0 %v3259_v49 }
  0x4f   : > { %2673 = vmatprep.subr.bf16.mxu0 %v2672_v29  ;;  %1280 = vxpose.xlu0.b32.cont [5/8] (short) (narrow) %v3158_v7, 32 }
  0x51   : > { %2424 = vmatmul.mubr.f32.gmra.mrb[4].mxu0 %v3279_v58 }
  0x52   : > { %2426 = vmatprep.mubr.f32.mxu0 %v3300_v4 }
  0x53   : > { %1281 = vxpose.xlu0.b32.cont [6/8] (short) (narrow) %v3163_v8, 32  ;;  %v3041_v8 = vmov 0.0  }
  0x54   : > { %2505 = vmatprep.mubr.msk.f32.mxu1 %vm3040_vm1, %v3041_v8 }
  0x55   : > { %2427 = vmatmul.mubr.f32.gmra.mrb[6].mxu0 %v3306_v28 }
  0x56   : > { %2437 = vmatprep.mubr.f32.mxu0 %v341_v33 }
  0x57   : > { %1282 = vxpose.xlu0.b32.cont [7/8] (short) (narrow) %v3179_v14, 32 }
  0x59   : > { %2438 = vmatmul.mubr.f32.vlgmr.msra.gmra.mrb[0].mxu0 %v351_v34 }
  0x5a   : > { %2675 = vmatpush3.bf16.msra.mxu0 %v2672_v29  ;;  %2440 = vmatprep.mubr.f32.mxu0 %v361_v35 }
  0x5b   : > { %2677 = vmatprep.subr.bf16.mxu0 %v2676_v0  ;;  %1283 = vxpose.xlu0.b32.end [8/8] (short) (narrow) %v3217_v27, 32 }
  0x5d   : > { %2441 = vmatmul.mubr.f32.gmra.mrb[2].mxu0 %v371_v48 }
  0x5e   : > { %2443 = vmatprep.mubr.f32.mxu0 %v381_v55  ;;  %2679 = vmatpush3.bf16.msra.mxu0 %v2676_v0 }
  0x5f   : > { %2681 = vmatprep.subr.bf16.mxu0 %v3250_v45 }
  0x61   : > { %2444 = vmatmul.mubr.f32.gmra.mrb[4].mxu0 %v391_v23 }
  0x62   : > { %2446 = vmatprep.mubr.f32.mxu0 %v401_v41 }
  0x65   : > { %2447 = vmatmul.mubr.f32.gmra.mrb[6].mxu0 %v411_v56  ;;  %v3429_v56 = vadd.s32 16, %v3423_v44 }
  0x66   : > { %2457 = vmatprep.mubr.f32.mxu0 %v3168_v10 }
  0x69   : > { %2458 = vmatmul.mubr.f32.vlgmr.msra.gmra.mrb[0].mxu0 %v3170_v11 }
  0x6a   : > { %2683 = vmatpush3.bf16.msra.mxu0 %v3250_v45  ;;  %2460 = vmatprep.mubr.f32.mxu0 %v3172_v12 }
  0x6b   : > { %2685 = vmatprep.subr.bf16.mxu0 %v3259_v49 }
  0x6d   : > { %2461 = vmatmul.mubr.f32.gmra.mrb[2].mxu0 %v3181_v15 }
  0x6e   : > { %2463 = vmatprep.mubr.f32.mxu0 %v3199_v22  ;;  %2687 = vmatpush3.bf16.msra.mxu0 %v3259_v49 }
  0x71   : > { %2464 = vmatmul.mubr.f32.gmra.mrb[4].mxu0 %v3210_v25 }
  0x72   : > { %2466 = vmatprep.mubr.f32.mxu0 %v3246_v43 }
  0x75   : > { %2467 = vmatmul.mubr.f32.gmra.mrb[6].mxu0 %v3287_v61 }
  0x76   : > { %2477 = vmatprep.mubr.f32.mxu0 %v3168_v10 }
  0x79   : > { %2478 = vmatmul.mubr.f32.vlgmr.msra.gmra.mrb[0].mxu0 %v3170_v11 }
  0x7a   : > { %2480 = vmatprep.mubr.f32.mxu0 %v3172_v12 }
  0x7d   : > { %2481 = vmatmul.mubr.f32.gmra.mrb[2].mxu0 %v3181_v15 }
  0x7e   : > { %2483 = vmatprep.mubr.f32.mxu0 %v3199_v22 }
  0x81   : > { %2484 = vmatmul.mubr.f32.gmra.mrb[4].mxu0 %v3210_v25 }
  0x82   : > { %2486 = vmatprep.mubr.f32.mxu0 %v3246_v43 }
  0x85   : > { %2487 = vmatmul.mubr.f32.gmra.mrb[6].mxu0 %v3287_v61 }
  0x93   : > { %v1067_v2 = vpop.permute.xlu0 %1066  ;;  %v1077_v22 = vpop.permute.xlu1 %1076 }
  0x97   : > { %v1072_v6 = vpop.permute.xlu0 %1071  ;;  %v1082_v24 = vpop.permute.xlu1 %1081 }
  0x9b   : > { %v1092_v35 = vpop.permute.xlu1 %1091 }
  0x9c   : > { %v1087_v7 = vpop.permute.xlu0 %1086 }
  0x9f   : > { %v1102_v53 = vpop.permute.xlu1 %1101 }
  0xa0   : > { %v1097_v10 = vpop.permute.xlu0 %1096 }
  0xbf   : > { %v1292_v11 = vpop.trf.xlu0 }
  0xc0   : > { %v1310_v12 = vsel %vm1308_vm2, %v1292_v11, 0 }
  0xc1   : > { %v3414_v14 = vand.u32 4294901760, %v1310_v12 }
  0xc3   : > { %v3417_v15 = vsub.f32 %v1310_v12, %v3414_v14 }
  0xc5   : > { %v1396_v19 = vand.u32 4294901760, %v3417_v15 }
  0xc7   : > { %v1397_v20 = vsub.f32 %v3417_v15, %v1396_v19 }
  0xc9   : > { %v1398_v21 = vand.u32 4294901760, %v1397_v20 }
  0xcb   : > { %2524 = vmatprep.mubr.f32.mxu0 %v1398_v21 }
 0x14c   : > { %v2479_v25 = vpop.f32.mrb[0].mxu0 }
 0x14d   : > { %v1010_v27 = vpop.f32.mrb[1].mxu0  ;;  %v1105_v43 = vsub.f32 %v1072_v6, %v2479_v25 }
 0x14e   : > { %v1104_v47 = vsub.f32 %v1067_v2, %v1010_v27  ;;  %v1293_v27 = vpop.trf.xlu0 }
 0x150   : > { %v2482_v33 = vpop.f32.mrb[2].mxu0 }
 0x151   : > { %v1022_v34 = vpop.f32.mrb[3].mxu0  ;;  %v1107_v58 = vsub.f32 %v1082_v24, %v2482_v33 }
 0x152   : > { %v1106_v61 = vsub.f32 %v1077_v22, %v1022_v34 }
 0x154   : > { %v2485_v40 = vpop.f32.mrb[4].mxu0 }
 0x155   : > { %v1109_v45 = vsub.f32 %v1092_v35, %v2485_v40  ;;  %v1034_v46 = vpop.f32.mrb[5].mxu0  ;;  %v1176_v35 = vand.u32 127, %v1112_v39 }
 0x156   : > { %v1108_v48 = vsub.f32 %v1087_v7, %v1034_v46 }
 0x157   : > { %v1122_v49 = vmin.f32 %v1105_v43, %v1109_v45 }
 0x158   : > { %v1121_v54 = vmin.f32 %v1104_v47, %v1108_v48  ;;  %v2488_v55 = vpop.f32.mrb[6].mxu0 }
 0x159   : > { %v1111_v59 = vsub.f32 %v1102_v53, %v2488_v55  ;;  %v1046_v60 = vpop.f32.mrb[7].mxu0 }
 0x15a   : > { %v1125_v4 = vmin.f32 %v1121_v54, %v1122_v49  ;;  %v1110_v13 = vsub.f32 %v1097_v10, %v1046_v60 }
 0x15b   : > { %v1124_v16 = vmin.f32 %v1107_v58, %v1111_v59 }
 0x15c   : > { %v1123_v23 = vmin.f32 %v1106_v61, %v1110_v13 }
 0x15e   : > { %v1126_v28 = vmin.f32 %v1123_v23, %v1124_v16 }
 0x160   : > { %v1127_v36 = vmin.f32 %v1125_v4, %v1126_v28 }
 0x162   : > { %v1128_v37 = vrot.slane %v1127_v36, 4 }
 0x164   : > { %v1129_v41 = vmin.f32 %v1127_v36, %v1128_v37 }
 0x166   : > { %v1130_v42 = vrot.slane %v1129_v41, 2 }
 0x168   : > { %v1131_v50 = vmin.f32 %v1129_v41, %v1130_v42 }
 0x16a   : > { %v1132_v51 = vrot.slane %v1131_v50, 1 }
 0x16c   : > { %v1133_v62 = vmin.f32 %v1131_v50, %v1132_v51 }
 0x16e   : > { %vm1134_vm3 = vcmp.le.f32.partialorder %v1104_v47, %v1133_v62  ;;  %vm1135_vm4 = vcmp.le.f32.partialorder %v1105_v43, %v1133_v62  ;;  %vm1136_vm5 = vcmp.le.f32.partialorder %v1106_v61, %v1133_v62  ;;  %vm1137_vm6 = vcmp.le.f32.partialorder %v1107_v58, %v1133_v62 }
 0x16f   : > { %vm1138_vm7 = vcmp.le.f32.partialorder %v1108_v48, %v1133_v62  ;;  %vm1139_vm8 = vcmp.le.f32.partialorder %v1109_v45, %v1133_v62  ;;  %vm1140_vm9 = vcmp.le.f32.partialorder %v1110_v13, %v1133_v62  ;;  %vm1141_vm10 = vcmp.le.f32.partialorder %v1111_v59, %v1133_v62  ;;  %v1294_v45 = vpop.trf.xlu0 }
 0x170   : > { %v1142_v18 = vsel %vm1134_vm3, %v3423_v44, 64  ;;  %v1143_v9 = vsel %vm1135_vm4, %v3426_v52, 64  ;;  %v1144_v26 = vsel %vm1136_vm5, %v3429_v56, 64  ;;  %v1145_v29 = vsel %vm1137_vm6, %v3432_v57, 64 }
 0x171   : > { %v1146_v0 = vsel %vm1138_vm7, %v3435_v63, 64  ;;  %v1147_v2 = vsel %vm1139_vm8, %v3438_v17, 64  ;;  %v1148_v6 = vsel %vm1140_vm9, %v3441_v3, 64  ;;  %v1149_v7 = vsel %vm1141_vm10, %v3444_v5, 64 }
 0x172   : > { %vm1150_vm11 = vcmp.lt.s32.totalorder %v1142_v18, %v1146_v0  ;;  %vm1152_vm12 = vcmp.lt.s32.totalorder %v1143_v9, %v1147_v2  ;;  %vm1154_vm13 = vcmp.lt.s32.totalorder %v1144_v26, %v1148_v6  ;;  %vm1156_vm14 = vcmp.lt.s32.totalorder %v1145_v29, %v1149_v7 }
 0x173   : > { %v1151_v10 = vsel %vm1150_vm11, %v1142_v18, %v1146_v0  ;;  %v1153_v11 = vsel %vm1152_vm12, %v1143_v9, %v1147_v2  ;;  %v1155_v12 = vsel %vm1154_vm13, %v1144_v26, %v1148_v6  ;;  %v1157_v20 = vsel %vm1156_vm14, %v1145_v29, %v1149_v7  ;;  %v1295_v55 = vpop.trf.xlu0 }
 0x174   : > { %vm1158_vm15 = vcmp.lt.s32.totalorder %v1151_v10, %v1153_v11  ;;  %vm1160_vm0 = vcmp.lt.s32.totalorder %v1155_v12, %v1157_v20  ;;  %vm1180_vm6 = vcmp.lt.s32.totalorder %v1176_v35, 8  ;;  %vm1173_vm7 = vcmp.lt.f32.partialorder %v1133_v62, inf }
 0x175   : > { %v1159_v21 = vsel %vm1158_vm15, %v1151_v10, %v1153_v11  ;;  %v1161_v22 = vsel %vm1160_vm0, %v1155_v12, %v1157_v20  ;;  %v1313_v47 = vsel %vm1308_vm2, %v1293_v27, 0  ;;  %v1316_v54 = vsel %vm1308_vm2, %v1294_v45, 0 }
 0x176   : > { %vm1162_vm1 = vcmp.lt.s32.totalorder %v1159_v21, %v1161_v22  ;;  %v3457_v53 = vand.u32 4294901760, %v1313_v47  ;;  %v3478_v59 = vand.u32 4294901760, %v1316_v54  ;;  %v1319_v60 = vsel %vm1308_vm2, %v1295_v55, 0 }
 0x177   : > { %v1163_v24 = vsel %vm1162_vm1, %v1159_v21, %v1161_v22  ;;  %v3042_v61 = vmov 1.0|1.0   ;;  %v3514_v23 = vand.u32 4294901760, %v1319_v60 }
 0x178   : > { %v1164_v25 = vrot.slane %v1163_v24, 4  ;;  %v3488_v4 = vsub.f32 %v1313_v47, %v3457_v53  ;;  %v3505_v16 = vsub.f32 %v1316_v54, %v3478_v59 }
 0x179   : > { %v3526_v39 = vsub.f32 %v1319_v60, %v3514_v23  ;;  %v3043_v60 = vmov 1.0  }
 0x17a   : > { %vm1165_vm3 = vcmp.lt.s32.totalorder %v1163_v24, %v1164_v25  ;;  %v1406_v37 = vand.u32 4294901760, %v3488_v4  ;;  %v1416_v42 = vand.u32 4294901760, %v3505_v16 }
 0x17b   : > { %v1166_v33 = vsel %vm1165_vm3, %v1163_v24, %v1164_v25 }
 0x17c   : > { %v1167_v34 = vrot.slane %v1166_v33, 2  ;;  %v1407_v51 = vsub.f32 %v3488_v4, %v1406_v37  ;;  %v1417_v18 = vsub.f32 %v3505_v16, %v1416_v42 }
 0x17e   : > { %vm1168_vm4 = vcmp.lt.s32.totalorder %v1166_v33, %v1167_v34  ;;  %v1408_v2 = vand.u32 4294901760, %v1407_v51 }
 0x17f   : > { %v1169_v40 = vsel %vm1168_vm4, %v1166_v33, %v1167_v34 }
 0x180   : > { %v1170_v43 = vrot.slane %v1169_v40, 1 }
 0x182   : > { %vm1171_vm5 = vcmp.lt.s32.totalorder %v1169_v40, %v1170_v43 }
 0x183   : > { %v1172_v46 = vsel %vm1171_vm5, %v1169_v40, %v1170_v43 }
 0x184   : > { %v1174_v48 = vsel %vm1173_vm7, %v1172_v46, 0 }
 0x185   : > { %v3455_v49 = vsel %vm1180_vm6, %v1174_v48, 4294967295 }
 0x186   : > { %vm1182_vm8 = vcmp.eq.s32.totalorder %v3423_v44, %v3455_v49  ;;  %vm1184_vm9 = vcmp.eq.s32.totalorder %v3429_v56, %v3455_v49  ;;  %vm1185_vm10 = vcmp.eq.s32.totalorder %v3432_v57, %v3455_v49  ;;  %vm1183_vm11 = vcmp.eq.s32.totalorder %v3426_v52, %v3455_v49 }
 0x187   : > { %vm3474_vm12 = vmpackc.low %vm1183_vm11, %vm1182_vm8  ;;  %vm1186_vm14 = vcmp.eq.s32.totalorder %v3435_v63, %v3455_v49  ;;  %vm1187_vm15 = vcmp.eq.s32.totalorder %v3438_v17, %v3455_v49  ;;  %v2168_v28 = vsel %vm1182_vm8, 1.0, %v3041_v8  ;;  %v2169_v36 = vsel %vm1183_vm11, 1.0, %v3041_v8 }
 0x188   : > { %2690 = vmatpush3.bf16.xpose.msk.msra.mxu1 %vm3474_vm12, %v3042_v61  ;;  %2701 = vmatprep.subr.msk.bf16.mxu0 %vm3474_vm12, %v3042_v61  ;;  %vm3496_vm13 = vmpackc.low %vm1185_vm10, %vm1184_vm9  ;;  %vm1188_vm1 = vcmp.eq.s32.totalorder %v3441_v3, %v3455_v49  ;;  %vm1189_vm3 = vcmp.eq.s32.totalorder %v3444_v5, %v3455_v49  ;;  %v3549_v44 = vsub.f32 %v2168_v28, %v2168_v28  ;;  %v1426_v52 = vand.u32 4294901760, %v3526_v39 }
 0x189   : > { %2703 = vmatpush3.bf16.msk.msra.mxu0 %vm3474_vm12, %v3042_v61  ;;  %2691 = vmatprep.subr.bf16.mxu1 %v3039_v1  ;;  %vm3537_vm0 = vmpackc.low %vm1187_vm15, %vm1186_vm14  ;;  %v3551_v50 = vsub.f32 %v2169_v36, %v2169_v36  ;;  %v2170_v9 = vsel %vm1184_vm9, 1.0, %v3041_v8  ;;  %v2171_v0 = vsel %vm1185_vm10, 1.0, %v3041_v8  ;;  %v1418_v56 = vand.u32 4294901760, %v1417_v18 }
 0x18a   : > { %2705 = vmatprep.subr.msk.bf16.mxu0 %vm3496_vm13, %v3042_v61  ;;  %vm3566_vm4 = vmpackc.low %vm1189_vm3, %vm1188_vm1  ;;  %v1437_v26 = vand.u32 4294901760, %v3549_v44  ;;  %v1427_v6 = vsub.f32 %v3526_v39, %v1426_v52  ;;  %v3596_v7 = vsub.f32 %v2170_v9, %v2170_v9  ;;  %v3604_v11 = vsub.f32 %v2171_v0, %v2171_v0 }
 0x18b   : > { %v1444_v29 = vand.u32 4294901760, %v3551_v50  ;;  %v2172_v12 = vsel %vm1186_vm14, 1.0, %v3041_v8  ;;  %v2173_v20 = vsel %vm1187_vm15, 1.0, %v3041_v8  ;;  %v2174_v63 = vsel %vm1188_vm1, 1.0, %v3041_v8 }
 0x18c   : > { %v1438_v10 = vsub.f32 %v3549_v44, %v1437_v26  ;;  %v1428_v21 = vand.u32 4294901760, %v1427_v6  ;;  %v2175_v22 = vsel %vm1189_vm3, 1.0, %v3041_v8  ;;  %v1451_v24 = vand.u32 4294901760, %v3596_v7 }
 0x18d   : > { %2707 = vmatpush3.bf16.msk.msra.mxu0 %vm3496_vm13, %v3042_v61  ;;  %v1445_v57 = vsub.f32 %v3551_v50, %v1444_v29  ;;  %v3627_v25 = vsub.f32 %v2172_v12, %v2172_v12  ;;  %v1458_v33 = vand.u32 4294901760, %v3604_v11  ;;  %v3632_v34 = vsub.f32 %v2174_v63, %v2174_v63 }
 0x18e   : > { %2709 = vmatprep.subr.msk.bf16.mxu0 %vm3537_vm0, %v3042_v61  ;;  %v1439_v17 = vand.u32 4294901760, %v1438_v10  ;;  %v3634_v3 = vsub.f32 %v2175_v22, %v2175_v22  ;;  %v1452_v5 = vsub.f32 %v3596_v7, %v1451_v24  ;;  %v2736_v10 = vpack.c.bf16 %v3604_v11, %v3596_v7 }
 0x18f   : > { %v1446_v27 = vand.u32 4294901760, %v1445_v57  ;;  %v1459_v35 = vsub.f32 %v3604_v11, %v1458_v33  ;;  %v1465_v40 = vand.u32 4294901760, %v3627_v25  ;;  %v1479_v45 = vand.u32 4294901760, %v3632_v34 }
 0x190   : > { %2693 = vmatpush3.bf16.xpose.msk.msra.mxu1 %vm3496_vm13, %v3042_v61  ;;  %v1486_v46 = vand.u32 4294901760, %v3634_v3  ;;  %v1453_v47 = vand.u32 4294901760, %v1452_v5  ;;  %v2744_v12 = vpack.c.bf16 %v3634_v3, %v3632_v34 }
 0x191   : > { %2711 = vmatpush3.bf16.msk.msra.mxu0 %vm3537_vm0, %v3042_v61  ;;  %2694 = vmatprep.subr.bf16.mxu1 %v3039_v1  ;;  %v2716_v8 = vpack.c.bf16 %v1446_v27, %v1439_v17  ;;  %v1460_v48 = vand.u32 4294901760, %v1459_v35  ;;  %v1466_v49 = vsub.f32 %v3627_v25, %v1465_v40  ;;  %v1480_v55 = vsub.f32 %v3632_v34, %v1479_v45 }
 0x192   : > { %2713 = vmatprep.subr.msk.bf16.mxu0 %vm3566_vm4, %v3042_v61  ;;  %v1487_v18 = vsub.f32 %v3634_v3, %v1486_v46 }
 0x193   : > { %v2720_v28 = vpack.c.bf16 %v1460_v48, %v1453_v47  ;;  %v1467_v36 = vand.u32 4294901760, %v1466_v49  ;;  %v1481_v0 = vand.u32 4294901760, %v1480_v55 }
 0x195   : > { %2715 = vmatpush3.bf16.msk.msra.mxu0 %vm3566_vm4, %v3042_v61 }
 0x198   : > { %2696 = vmatpush3.bf16.xpose.msk.msra.mxu1 %vm3537_vm0, %v3042_v61  ;;  %2525 = vmatmul.mubr.f32.vlgmr.msra.gmra.mrb[8].mxu0 %v1408_v2  ;;  %v1488_v2 = vand.u32 4294901760, %v1487_v18 }
 0x199   : > { %2697 = vmatprep.subr.bf16.mxu1 %v3039_v1  ;;  %2527 = vmatprep.mubr.f32.mxu0 %v1418_v56  ;;  %v3630_v1 = vsub.f32 %v2173_v20, %v2173_v20  ;;  %v2732_v56 = vpack.c.bf16 %v3551_v50, %v3549_v44  ;;  %v2764_v20 = vpack.c.bf16 %v1444_v29, %v1437_v26 }
 0x19a   : > { %v2728_v6 = vpack.c.bf16 %v1488_v2, %v1481_v0 }
 0x19b   : > { %v1472_v43 = vand.u32 4294901760, %v3630_v1  ;;  %v2740_v57 = vpack.c.bf16 %v3630_v1, %v3627_v25 }
 0x19c   : > { %2528 = vmatmul.mubr.f32.gmra.mrb[10].mxu0 %v1428_v21 }
 0x19d   : > { %v1473_v54 = vsub.f32 %v3630_v1, %v1472_v43 }
 0x19f   : > { %v1474_v51 = vand.u32 4294901760, %v1473_v54 }
 0x1a0   : > { %2699 = vmatpush3.bf16.xpose.msk.msra.mxu1 %vm3566_vm4, %v3042_v61 }
 0x1a1   : > { %2717 = vmatprep.subr.bf16.mxu1 %v2716_v8  ;;  %v2724_v9 = vpack.c.bf16 %v1474_v51, %v1467_v36 }
 0x1a7   : > { %2506 = vmatmul.mubr.f32.vlgmr.msra.gmra.mrb[0].mxu1 %v3043_v60 }
 0x1a8   : > { %2719 = vmatpush3.bf16.msra.mxu1 %v2716_v8  ;;  %2546 = vmatprep.mubr.f32.mxu1 %v3414_v14 }
 0x1a9   : > { %2721 = vmatprep.subr.bf16.mxu1 %v2720_v28 }
 0x1ac   : > { %2723 = vmatpush3.bf16.msra.mxu1 %v2720_v28 }
 0x1ad   : > { %2725 = vmatprep.subr.bf16.mxu1 %v2724_v9 }
 0x1b0   : > { %2727 = vmatpush3.bf16.msra.mxu1 %v2724_v9 }
 0x1b1   : > { %2729 = vmatprep.subr.bf16.mxu1 %v2728_v6 }
 0x1b4   : > { %2731 = vmatpush3.bf16.msra.mxu1 %v2728_v6 }
 0x1b5   : > { %2733 = vmatprep.subr.bf16.mxu1 %v2732_v56 }
 0x1b7   : > { %2547 = vmatmul.mubr.f32.vlgmr.msra.gmra.mrb[2].mxu1 %v3457_v53 }
 0x1b8   : > { %2735 = vmatpush3.bf16.msra.mxu1 %v2732_v56  ;;  %2549 = vmatprep.mubr.f32.mxu1 %v3478_v59 }
 0x1b9   : > { %2737 = vmatprep.subr.bf16.mxu1 %v2736_v10 }
 0x1bb   : > { %2550 = vmatmul.mubr.f32.gmra.mrb[4].mxu1 %v3514_v23 }
 0x1bc   : > { %2739 = vmatpush3.bf16.msra.mxu1 %v2736_v10  ;;  %2568 = vmatprep.mubr.f32.mxu1 %v3417_v15  ;;  %v2768_v15 = vpack.c.bf16 %v1458_v33, %v1451_v24 }
 0x1bd   : > { %2741 = vmatprep.subr.bf16.mxu1 %v2740_v57 }
 0x1c0   : > { %2743 = vmatpush3.bf16.msra.mxu1 %v2740_v57 }
 0x1c1   : > { %2745 = vmatprep.subr.bf16.mxu1 %v2744_v12 }
 0x1c4   : > { %2747 = vmatpush3.bf16.msra.mxu1 %v2744_v12 }
 0x1c5   : > { %2749 = vmatprep.subr.msk.bf16.mxu1 %vm3474_vm12, %v3042_v61 }
 0x1c7   : > { %2569 = vmatmul.mubr.f32.vlgmr.msra.gmra.mrb[2].mxu1 %v3488_v4  ;;  %v2776_v4 = vpack.c.bf16 %v1486_v46, %v1479_v45 }
 0x1c8   : > { %2571 = vmatprep.mubr.f32.mxu1 %v3505_v16  ;;  %2751 = vmatpush3.bf16.msk.msra.mxu1 %vm3474_vm12, %v3042_v61 }
 0x1c9   : > { %2753 = vmatprep.subr.msk.bf16.mxu1 %vm3496_vm13, %v3042_v61 }
 0x1cb   : > { %2572 = vmatmul.mubr.f32.gmra.mrb[4].mxu1 %v3526_v39 }
 0x1cc   : > { %2755 = vmatpush3.bf16.msk.msra.mxu1 %vm3496_vm13, %v3042_v61  ;;  %2590 = vmatprep.mubr.f32.mxu1 %v1396_v19  ;;  %v2772_v19 = vpack.c.bf16 %v1472_v43, %v1465_v40 }
 0x1cd   : > { %2757 = vmatprep.subr.msk.bf16.mxu1 %vm3537_vm0, %v3042_v61 }
 0x1d0   : > { %2759 = vmatpush3.bf16.msk.msra.mxu1 %vm3537_vm0, %v3042_v61 }
 0x1d1   : > { %2761 = vmatprep.subr.msk.bf16.mxu1 %vm3566_vm4, %v3042_v61 }
 0x1d4   : > { %2763 = vmatpush3.bf16.msk.msra.mxu1 %vm3566_vm4, %v3042_v61 }
 0x1d5   : > { %2765 = vmatprep.subr.bf16.mxu1 %v2764_v20 }
 0x1d7   : > { %2591 = vmatmul.mubr.f32.vlgmr.msra.gmra.mrb[2].mxu1 %v1406_v37 }
 0x1d8   : > { %2593 = vmatprep.mubr.f32.mxu1 %v1416_v42  ;;  %2767 = vmatpush3.bf16.msra.mxu1 %v2764_v20 }
 0x1d9   : > { %2769 = vmatprep.subr.bf16.mxu1 %v2768_v15 }
 0x1db   : > { %2594 = vmatmul.mubr.f32.gmra.mrb[4].mxu1 %v1426_v52 }
 0x1dc   : > { %2771 = vmatpush3.bf16.msra.mxu1 %v2768_v15  ;;  %2612 = vmatprep.mubr.f32.mxu1 %v3414_v14 }
 0x1dd   : > { %2773 = vmatprep.subr.bf16.mxu1 %v2772_v19 }
 0x1e0   : > { %2775 = vmatpush3.bf16.msra.mxu1 %v2772_v19 }
 0x1e1   : > { %2777 = vmatprep.subr.bf16.mxu1 %v2776_v4 }
 0x1e4   : > { %2779 = vmatpush3.bf16.msra.mxu1 %v2776_v4 }
 0x1e5   : > { %2781 = vmatprep.subr.msk.bf16.mxu1 %vm3474_vm12, %v3042_v61 }
 0x1e7   : > { %2613 = vmatmul.mubr.f32.vlgmr.msra.gmra.mrb[2].mxu1 %v3457_v53 }
 0x1e8   : > { %2615 = vmatprep.mubr.f32.mxu1 %v3478_v59  ;;  %2783 = vmatpush3.bf16.msk.msra.mxu1 %vm3474_vm12, %v3042_v61 }
 0x1e9   : > { %2785 = vmatprep.subr.msk.bf16.mxu1 %vm3496_vm13, %v3042_v61 }
 0x1eb   : > { %2616 = vmatmul.mubr.f32.gmra.mrb[4].mxu1 %v3514_v23 }
 0x1ec   : > { %2787 = vmatpush3.bf16.msk.msra.mxu1 %vm3496_vm13, %v3042_v61  ;;  %2634 = vmatprep.mubr.f32.mxu1 %v3414_v14 }
 0x1ed   : > { %2789 = vmatprep.subr.msk.bf16.mxu1 %vm3537_vm0, %v3042_v61 }
 0x1f0   : > { %2791 = vmatpush3.bf16.msk.msra.mxu1 %vm3537_vm0, %v3042_v61 }
 0x1f1   : > { %2793 = vmatprep.subr.msk.bf16.mxu1 %vm3566_vm4, %v3042_v61 }
 0x1f4   : > { %2795 = vmatpush3.bf16.msk.msra.mxu1 %vm3566_vm4, %v3042_v61 }
 0x1f7   : > { %2635 = vmatmul.mubr.f32.vlgmr.msra.gmra.mrb[2].mxu1 %v3457_v53 }
 0x1f8   : > { %2637 = vmatprep.mubr.f32.mxu1 %v3478_v59 }
 0x1fb   : > { %2638 = vmatmul.mubr.f32.gmra.mrb[4].mxu1 %v3514_v23 }
 0x26b   : > { %v2526_v14 = vpop.f32.mrb[8].mxu0 }
 0x26c   : > { %v1400_v58 = vpop.f32.mrb[9].mxu0 }
 0x26f   : > { %v2529_v13 = vpop.f32.mrb[10].mxu0 }
 0x270   : > { %v1420_v16 = vpop.f32.mrb[11].mxu0 }
 0x27a   : > { %v3757_v37 = vpop.f32.mrb[0].mxu1 }
 0x27b   : > { %v2507_v39 = vpop.f32.mrb[1].mxu1 }
 0x2ca   : > { %v2636_v41 = vpop.f32.mrb[2].mxu1 }
 0x2cb   : > { %v2796_v42 = vadd.f32 %v2636_v41, %v2526_v14  ;;  %v1965_v61 = vpop.f32.mrb[3].mxu1 }
 0x2cc   : > { %v2797_v44 = vadd.f32 %v1965_v61, %v1400_v58 }
 0x2cd   : > { %1988 = vst [vmem:[%s218_s10 + $0x8] sm:$0xff] %v2796_v42  ;;  %v1992_v53 = vsub.f32 %v2796_v42, %v3227_v31 }
 0x2ce   : > { %1987 = vst [vmem:[%s218_s10] sm:$0xff] %v2797_v44  ;;  %v2639_v59 = vpop.f32.mrb[4].mxu1  ;;  %v1991_v62 = vsub.f32 %v2797_v44, %v3225_v30 }
 0x2cf   : > { %v2798_v23 = vadd.f32 %v2639_v59, %v2529_v13  ;;  %v1977_v50 = vpop.f32.mrb[5].mxu1  ;;  %v1996_v52 = vmul.f32 %v1992_v53, %v1992_v53 }
 0x2d0   : > { %v2799_v26 = vadd.f32 %v1977_v50, %v1420_v16  ;;  %v1995_v29 = vmul.f32 %v1991_v62, %v1991_v62 }
 0x2d1   : > { %1990 = vst [vmem:[%s218_s10 + $0x18] sm:$0xff] %v2798_v23  ;;  %2001 = vadd.xlane.f32.xlu1 %v1996_v52  ;;  %v1994_v31 = vsub.f32 %v2798_v23, %v3236_v38 }
 0x2d2   : > { %1989 = vst [vmem:[%s218_s10 + $0x10] sm:$0xff] %v2799_v26  ;;  %v1993_v7 = vsub.f32 %v2799_v26, %v3229_v32 }
 0x2d3   : > { %v1998_v21 = vmul.f32 %v1994_v31, %v1994_v31 }
 0x2d4   : > { %v1997_v11 = vmul.f32 %v1993_v7, %v1993_v7 }
 0x2d5   : > { %1999 = vadd.xlane.f32.xlu1 %v1995_v29 }
 0x2d9   : > { %2003 = vadd.xlane.f32.xlu1 %v1997_v11 }
 0x2dd   : > { %2005 = vadd.xlane.f32.xlu1 %v1998_v21 }
 0x2de   : > { %2939 = shalt.err (!%p2936_p5)
}
 0x2df   : > { %s2940_s5 = scalar_lea.hbm %s3773_s21, 512  ;;  %s2944_s9 = scalar_lea.hbm %s3857_s3, 1024 }
 0x2e0   : > { %p2941_p6 = scmp.ne.s32.totalorder %s3773_s21, %s2940_s5  ;;  %p2945_p10 = scmp.lt.u32.totalorder %s3773_s21, %s3857_s3 }
 0x2e1   : > { %p2946_p11 = scmp.lt.u32.totalorder %s2944_s9, %s2940_s5  ;;  %p2948_p13 = scmp.lt.u32.totalorder %s2940_s5, %s3773_s21 }
 0x2e2   : > { %p2942_p7 = pnand %p2941_p6, %p3113_p4 }
 0x2e3   : > { %p2947_p12 = por %p2946_p11, %p2945_p10 }
 0x2e4   : > { %p2943_p9 = pneg %p2942_p7 }
 0x2e5   : > { %p2949_p0 = por %p2948_p13, %p2947_p12 }
 0x2e7   : > { %p2950_p1 = pnand %p2949_p0, %p2943_p9 }
 0x2e9   : > { %2953 = shalt.err (!%p2950_p1)
}
 0x2ea   : > { %s3045_s13 = smov 128   ;;  %s3046_s14 = smov 8   ;;  %vm2017_vm5 = vcmask 531456  }
 0x2eb   : > { %2856 = dma.vmem_to_hbm [thread:$0]  (%p3113_p4), %s3767_s11, 512, %s3773_s21, %s2021_s22, %s3045_s13, %s3045_s13, %s3046_s14  }
 0x2ec   : > { %s2211_s24 = sshll.u32 %s3028_s18, 4  ;;  %s224_s26 = scalar_lea.vmem [#allocation4], %s3760_s8 }
 0x2ed   : > { %s2056_s29 = sshll.u32 %s224_s26, 4  ;;  %s3806_s22 = scalar_lea.hbm %s3858_s4, %s2211_s24  ;;  %s3808_s29 = int_to_ptr.vmem [resolvable:$true] %s2056_s29 }
 0x2ee   : > { %s2026_s18 = scalar_lea.sflag [#allocation5], %s3760_s8  ;;  %s2954_s30 = scalar_lea.vmem %s3808_s29, 16 }
 0x2ef   : > { %p2955_p2 = scmp.ne.s32.totalorder %s3808_s29, %s2954_s30  ;;  %s3047_s5 = smov [#allocation4]  }
 0x2f0   : > { %s2958_s6 = sshll.u32 %s3047_s5, 4  ;;  %s2959_s6 = int_to_ptr.vmem [resolvable:$false] %s2958_s6 }
 0x2f1   : > { %p2956_p3 = pnand %p2955_p2, %p3113_p4  ;;  %s2960_s7 = scalar_lea.vmem %s2959_s6, 32 }
 0x2f2   : > { %p2961_p6 = scmp.lt.s32.totalorder %s3808_s29, %s2959_s6  ;;  %p2962_p7 = scmp.lt.s32.totalorder %s2960_s7, %s2954_s30 }
 0x2f3   : > { %p2957_p5 = pneg %p2956_p3 }
 0x2f4   : > { %p2963_p9 = por %p2962_p7, %p2961_p6 }
 0x2f6   : > { %p2964_p10 = pnand %p2963_p9, %p2957_p5 }
 0x35e   : > { %v2002_v30 = vpop.xlane.xlu1 %2001 }
 0x362   : > { %v2000_v32 = vpop.xlane.xlu1 %1999 }
 0x363   : > { %v2007_v63 = vadd.f32 %v2002_v30, %v2000_v32 }
 0x366   : > { %v2004_v38 = vpop.xlane.xlu1 %2003 }
 0x367   : > { %v2008_v22 = vadd.f32 %v2007_v63, %v2004_v38 }
 0x36a   : > { %v2006_v24 = vpop.xlane.xlu1 %2005 }
 0x36b   : > { %v2009_v25 = vadd.f32 %v2008_v22, %v2006_v24 }
 0x36d   : > { %v2010_v17 = vrot.slane %v2009_v25, 4 }
 0x36f   : > { %v2011_v27 = vadd.f32 %v2010_v17, %v2009_v25 }
 0x371   : > { %v2012_v33 = vrot.slane %v2011_v27, 2 }
 0x373   : > { %v2013_v1 = vadd.f32 %v2012_v33, %v2011_v27 }
 0x375   : > { %v2014_v34 = vrot.slane %v2013_v1, 1 }
 0x377   : > { %v2015_v3 = vadd.f32 %v2014_v34, %v2013_v1 }
 0x379   : > { %v2016_v5 = vsel %vm1308_vm2, %v3757_v37, %v2015_v3 }
 0x37a   : > { %v2018_v8 = vsel %vm2017_vm5, %v2016_v5, 0.0 }
 0x37b   : > { %2019 = vst [vmem:[%s224_s26] sm:$0x1] %v2018_v8 }
 0x37c   : > { %2967 = shalt.err (!%p2964_p10)
}
 0x37d   : > { %s2968_s8 = scalar_lea.hbm %s3806_s22, 16  ;;  %s2972_s12 = scalar_lea.hbm %s3858_s4, 32 }
 0x37e   : > { %p2969_p11 = scmp.ne.s32.totalorder %s3806_s22, %s2968_s8  ;;  %p2973_p0 = scmp.lt.u32.totalorder %s3806_s22, %s3858_s4 }
 0x37f   : > { %p2974_p1 = scmp.lt.u32.totalorder %s2972_s12, %s2968_s8  ;;  %p2976_p3 = scmp.lt.u32.totalorder %s2968_s8, %s3806_s22 }
 0x380   : > { %p2970_p12 = pnand %p2969_p11, %p3113_p4 }
 0x381   : > { %p2975_p2 = por %p2974_p1, %p2973_p0 }
 0x382   : > { %p2971_p13 = pneg %p2970_p12 }
 0x383   : > { %p2977_p5 = por %p2976_p3, %p2975_p2 }
 0x385   : > { %p2978_p6 = pnand %p2977_p5, %p2971_p13 }
 0x387   : > { %2981 = shalt.err (!%p2978_p6)
}
 0x388   : > { %2857 = dma.vmem_to_hbm [thread:$0]  (%p3113_p4), %s3808_s29, 16, %s3806_s22, %s2026_s18  }
 0x389 PF: > { %p2867_p7 = scmp.ge.s32.totalorder %s3036_s20, 2  ;;  %s2068_s24 = sand.u32 1, %s3016_s15  }
 0x38a   : > { %s2069_s26 = scalar_lea.sflag [#allocation3], %s2068_s24 }
 0x38b   : > { %p2861_p9 = pnand %p2867_p7, %p3120_p8 }
 0x38d   : > { %3007 = dma.done.wait (!%p2861_p9), %s2069_s26, 512  }
 0x38e   : > { %3009 = vsyncadd (!%p2861_p9), %s2069_s26, 4294966784  ;;  %s2078_s11 = scalar_lea.sflag [#allocation5], %s2068_s24 }
 0x38f   : > { %3011 = dma.done.wait (!%p2861_p9), %s2078_s11, 16  }
 0x390   : > { %3013 = vsyncadd (!%p2861_p9), %s2078_s11, 4294967280  ;;  %s21_s20 = sadd.s32 1, %s3036_s20   ;;  %s3869_s15 = smov %s3020_s16 }
 0x391   : > { %p18_p10 = scmp.ge.s32.totalorder %s21_s20, 4   ;;  %s3870_s16 = smov %s3024_s17 }
 0x392   : > { %s3871_s17 = smov %s3126_s28  ;;  %s3872_s18 = smov %s3032_s19 }
 0x393   : > { %s3873_s19 = smov %s3875_s23  ;;  %20 = sbr.rel (!%p18_p10) target bundleno = 6 (0x6), region = 84 }
 0x39a   :  { %2082 = vsyncpa [#allocation3], 1 }
 0x39b   :  { %2084 = vsyncpa [#allocation3 + $0x1], 1 }
 0x39c   :  { %2085 = vsyncpa [#allocation5], 1 }
 0x39d   :  { %2087 = vsyncpa [#allocation5 + $0x1], 1 }

</bundles_post_ra>
